<compile_context>
chip_gen: v6e
topology: v6e:2x2x1
jax: 0.10.0
libtpu: 0.0.40
codegen_flags: <defaults>
</compile_context>

<pallas_src>
import functools

import jax
import jax.numpy as jnp
from jax.experimental import pallas as pl
from jax.experimental.pallas import tpu as pltpu


def _round_up(x, m):
    return ((x + m - 1) // m) * m


# ---------------------------------------------------------------------------
# Kernel A: batched input projection (fc + input-side GRU gates), parallel.
# ---------------------------------------------------------------------------
def input_proj_kernel(x_ref, wfc_ref, bfc_ref, wi_ref, bi_ref, gi_ref):
    # x_ref:  (R, L)     rows = flattened (time, batch), R = Ta*Bp
    # wfc:    (L, Hp)    bfc: (1, Hp)        (Hp lane-padded, zero columns)
    # wi:     (Hp, 3Og)  bi:  (1, 3Og)       (biases b_i + b_h folded for r,z)
    # gi_ref: (R, 3Og)
    fcx = jnp.dot(x_ref[...].astype(wfc_ref.dtype), wfc_ref[...],
                  preferred_element_type=jnp.float32) + bfc_ref[...]
    gi = jnp.dot(fcx.astype(wi_ref.dtype), wi_ref[...],
                 preferred_element_type=jnp.float32) + bi_ref[...]
    gi_ref[...] = gi.astype(gi_ref.dtype)


# ---------------------------------------------------------------------------
# Kernel B: sequential GRU recurrence, T timesteps per grid step,
#           batch tiles on a parallel axis (megacore), batch-major output.
# ---------------------------------------------------------------------------
def gru_chunk_kernel(gi_ref, wh_ref, bhn_ref, out_ref, h_scratch, *, unroll):
    # gi_ref:    (T, tile_b, 3Og)  precomputed input-side gates (time-major)
    # wh_ref:    (Og, 3Og)         [Whr|Whz|Whn]^T, zero-padded to lane multiples
    # bhn_ref:   (1, Og)
    # out_ref:   (tile_b, T, Og)   batch-major output chunk
    # h_scratch: (tile_b, Og)      hidden state carried across time chunks
    @pl.when(pl.program_id(1) == 0)
    def _():
        h_scratch[...] = jnp.zeros_like(h_scratch)

    T = gi_ref.shape[0]
    Og = wh_ref.shape[0]
    wh = wh_ref[...]                                           # loop-invariant
    bhn = jnp.broadcast_to(bhn_ref[...], h_scratch.shape)      # hoisted broadcast

    def step_block(j, carry):
        base = pl.multiple_of(j * unroll, unroll)
        for u in range(unroll):                                # partial unroll
            i = base + u
            h_prev = h_scratch[...]                            # (tile_b, Og)
            gi = gi_ref[i]                                     # (tile_b, 3Og)
            gh = jnp.dot(h_prev.astype(wh.dtype), wh,
                         preferred_element_type=jnp.float32)   # (tile_b, 3Og)
            r = jax.nn.sigmoid(gi[:, 0:Og] + gh[:, 0:Og])
            z = jax.nn.sigmoid(gi[:, Og:2 * Og] + gh[:, Og:2 * Og])
            n = jnp.tanh(gi[:, 2 * Og:3 * Og] + r * (gh[:, 2 * Og:3 * Og] + bhn))
            h_new = n + z * (h_prev - n)                       # == (1-z)*n + z*h
            h_scratch[...] = h_new
            out_ref[:, pl.ds(i, 1), :] = h_new[:, None, :].astype(out_ref.dtype)
        return carry

    jax.lax.fori_loop(0, T // unroll, step_block, 0)


# ---------------------------------------------------------------------------
# Wrapper
# ---------------------------------------------------------------------------
def recovery_forward(h, params, *, chunk_t=64, unroll=4,
                     compute_dtype=jnp.float32,
                     vmem_limit_bytes=32 * 1024 * 1024):
    """h: (B, S, latent_dim) -> output: (B, S, output_dim)."""
    B, S, L = h.shape
    H = params["w_fc"].shape[0]        # hidden_dim
    O = params["w_hr"].shape[0]        # output_dim
    f32 = jnp.float32
    cdt = compute_dtype

    # ---- lane/sublane-aligned sizes -----------------------------------------
    Og = _round_up(O, 128)             # each gate padded to a lane multiple
    Hp = _round_up(H, 128)             # fc width padded to a lane multiple
    Bp = _round_up(max(B, 8), 8)       # batch padded to sublane multiple

    # Batch tiles for Kernel B: split independent batch rows across the
    # parallel grid axis (v7x megacore gets ~2x on the recurrence for Bp>=16).
    n_btiles = 2 if Bp >= 16 else 1
    Bp = _round_up(Bp, 8 * n_btiles)
    tile_b = Bp // n_btiles

    budget = int(vmem_limit_bytes * 0.85)

    # ---- time chunk T for Kernel B (amortize per-grid-step overhead) ---------
    T = min(_round_up(chunk_t, 8), _round_up(S, 8))

    def _b_bytes(t):
        return 4 * (2 * t * tile_b * 3 * Og          # gi chunk (double buffered)
                    + 2 * tile_b * t * Og            # out chunk (double buffered)
                    + 2 * (Og * 3 * Og + Og)         # weights (worst-case 2 bufs)
                    + tile_b * Og)                   # h scratch

    while T > 8 and _b_bytes(T) > budget:
        T -= 8
    Sp = _round_up(S, T)

    # partial-unroll factor must divide T (T is a multiple of 8)
    unroll_eff = 1
    for d in (2, 4, 8):
        if d <= max(1, unroll) and T % d == 0:
            unroll_eff = d

    # ---- row tile for Kernel A: Ta timesteps * Bp rows, Ta must divide Sp ----
    def _a_bytes(ta):
        rows = ta * Bp
        return 4 * (2 * rows * L + 2 * rows * 3 * Og
                    + 2 * (L * Hp + Hp + Hp * 3 * Og + 3 * Og))

    Ta = 1
    for cand in range(Sp, 0, -1):
        if Sp % cand == 0 and cand * Bp <= max(2048, Bp) and _a_bytes(cand) <= budget:
            Ta = cand
            break
    R = Ta * Bp                                       # rows per Kernel A step

    # ---- weight prep: transpose, lane-pad each gate, concatenate, fold biases
    def pad2(w, rows, cols):
        return jnp.pad(w, ((0, rows - w.shape[0]), (0, cols - w.shape[1])))

    def pad1(b, n):
        return jnp.pad(b, (0, n - b.shape[0]))

    wfc = pad2(params["w_fc"].T.astype(f32), L, Hp).astype(cdt)            # (L, Hp)
    bfc = pad1(params["b_fc"].astype(f32), Hp)[None, :]                    # (1, Hp)

    def gate_i(w):                                    # (O, H) -> (Hp, Og)
        return pad2(w.T.astype(f32), Hp, Og)

    def gate_h(w):                                    # (O, O) -> (Og, Og)
        return pad2(w.T.astype(f32), Og, Og)

    def gate_b(b):                                    # (O,) -> (Og,)
        return pad1(b.astype(f32), Og)

    wi_cat = jnp.concatenate(
        [gate_i(params["w_ir"]), gate_i(params["w_iz"]), gate_i(params["w_in"])],
        axis=1).astype(cdt)                                                # (Hp, 3Og)
    bi_cat = jnp.concatenate(
        [gate_b(params["b_ir"] + params["b_hr"]),
         gate_b(params["b_iz"] + params["b_hz"]),
         gate_b(params["b_in"])])[None, :]                                 # (1, 3Og)
    wh_cat = jnp.concatenate(
        [gate_h(params["w_hr"]), gate_h(params["w_hz"]), gate_h(params["w_hn"])],
        axis=1).astype(cdt)                                                # (Og, 3Og)
    bhn = gate_b(params["b_hn"])[None, :]                                  # (1, Og)

    # ---- layout: time-major input, padded ONCE to (Sp, Bp, L) -----------------
    x_tm = jnp.transpose(h.astype(f32), (1, 0, 2))           # (S, B, L)
    x_tm = jnp.pad(x_tm, ((0, Sp - S), (0, Bp - B), (0, 0))) # (Sp, Bp, L)
    x_rows = x_tm.reshape(Sp * Bp, L)                        # free (contiguous)

    # ---- Kernel A: input projection for all timesteps -------------------------
    gi_rows = pl.pallas_call(
        input_proj_kernel,
        out_shape=jax.ShapeDtypeStruct((Sp * Bp, 3 * Og), f32),
        grid_spec=pltpu.PrefetchScalarGridSpec(
            num_scalar_prefetch=0,
            grid=(Sp // Ta,),
            in_specs=[
                pl.BlockSpec((R, L), lambda m: (m, 0)),
                pl.BlockSpec((L, Hp), lambda m: (0, 0)),
                pl.BlockSpec((1, Hp), lambda m: (0, 0)),
                pl.BlockSpec((Hp, 3 * Og), lambda m: (0, 0)),
                pl.BlockSpec((1, 3 * Og), lambda m: (0, 0)),
            ],
            out_specs=pl.BlockSpec((R, 3 * Og), lambda m: (m, 0)),
        ),
        compiler_params=pltpu.CompilerParams(
            dimension_semantics=("parallel",),
            vmem_limit_bytes=vmem_limit_bytes,
        ),
    )(x_rows, wfc, bfc, wi_cat, bi_cat)

    gi = gi_rows.reshape(Sp, Bp, 3 * Og)                     # free (contiguous)

    # ---- Kernel B: chunked sequential GRU recurrence, batch-major output ------
    out_bm = pl.pallas_call(
        functools.partial(gru_chunk_kernel, unroll=unroll_eff),
        out_shape=jax.ShapeDtypeStruct((Bp, Sp, Og), f32),
        grid_spec=pltpu.PrefetchScalarGridSpec(
            num_scalar_prefetch=0,
            grid=(n_btiles, Sp // T),
            in_specs=[
                pl.BlockSpec((T, tile_b, 3 * Og), lambda b, t: (t, b, 0)),
                pl.BlockSpec((Og, 3 * Og), lambda b, t: (0, 0)),
                pl.BlockSpec((1, Og), lambda b, t: (0, 0)),
            ],
            out_specs=pl.BlockSpec((tile_b, T, Og), lambda b, t: (b, t, 0)),
            scratch_shapes=[pltpu.VMEM((tile_b, Og), f32)],
        ),
        compiler_params=pltpu.CompilerParams(
            dimension_semantics=("parallel", "arbitrary"),
            vmem_limit_bytes=vmem_limit_bytes,
        ),
    )(gi, wh_cat, bhn)

    # Output is already batch-major; just strip the padding (no transpose pass).
    return out_bm[:B, :S, :O]


# ---------------------------------------------------------------------------
# Params / reference
# ---------------------------------------------------------------------------
def init_params(key, latent_dim, hidden_dim, output_dim):
    ks = jax.random.split(key, 14)
    s = 0.1
    return {
        "w_fc": s * jax.random.normal(ks[0], (hidden_dim, latent_dim), jnp.float32),
        "b_fc": s * jax.random.normal(ks[1], (hidden_dim,), jnp.float32),
        "w_ir": s * jax.random.normal(ks[2], (output_dim, hidden_dim), jnp.float32),
        "w_iz": s * jax.random.normal(ks[3], (output_dim, hidden_dim), jnp.float32),
        "w_in": s * jax.random.normal(ks[4], (output_dim, hidden_dim), jnp.float32),
        "w_hr": s * jax.random.normal(ks[5], (output_dim, output_dim), jnp.float32),
        "w_hz": s * jax.random.normal(ks[6], (output_dim, output_dim), jnp.float32),
        "w_hn": s * jax.random.normal(ks[7], (output_dim, output_dim), jnp.float32),
        "b_ir": s * jax.random.normal(ks[8], (output_dim,), jnp.float32),
        "b_iz": s * jax.random.normal(ks[9], (output_dim,), jnp.float32),
        "b_in": s * jax.random.normal(ks[10], (output_dim,), jnp.float32),
        "b_hr": s * jax.random.normal(ks[11], (output_dim,), jnp.float32),
        "b_hz": s * jax.random.normal(ks[12], (output_dim,), jnp.float32),
        "b_hn": s * jax.random.normal(ks[13], (output_dim,), jnp.float32),
    }


def recovery_forward_ref(h, params):
    """Pure-JAX reference of Linear + PyTorch-semantics GRU."""
    B, S, L = h.shape
    O = params["w_hr"].shape[0]
    x = jnp.einsum("bsl,hl->bsh", h, params["w_fc"]) + params["b_fc"]

    def step(h_prev, x_t):
        gi_r = x_t @ params["w_ir"].T + params["b_ir"]
        gi_z = x_t @ params["w_iz"].T + params["b_iz"]
        gi_n = x_t @ params["w_in"].T + params["b_in"]
        gh_r = h_prev @ params["w_hr"].T + params["b_hr"]
        gh_z = h_prev @ params["w_hz"].T + params["b_hz"]
        gh_n = h_prev @ params["w_hn"].T + params["b_hn"]
        r = jax.nn.sigmoid(gi_r + gh_r)
        z = jax.nn.sigmoid(gi_z + gh_z)
        n = jnp.tanh(gi_n + r * gh_n)
        h_new = (1.0 - z) * n + z * h_prev
        return h_new, h_new

    h0 = jnp.zeros((B, O), jnp.float32)
    _, ys = jax.lax.scan(step, h0, jnp.transpose(x, (1, 0, 2)))
    return jnp.transpose(ys, (1, 0, 2))


if __name__ == "__main__":
    latent_dim, hidden_dim, output_dim = 16, 32, 32
    batch, seq = 4, 8

    key = jax.random.PRNGKey(0)
    k_in, k_p = jax.random.split(key)
    h = jax.random.normal(k_in, (batch, seq, latent_dim), jnp.float32)
    params = init_params(k_p, latent_dim, hidden_dim, output_dim)

    ref = recovery_forward_ref(h, params)

    # f32 MXU path: matches the f32 reference tightly.
    fwd_f32 = jax.jit(functools.partial(recovery_forward, chunk_t=64, unroll=4))
    out = jax.block_until_ready(fwd_f32(h, params))
    assert out.shape == (batch, seq, output_dim)
    assert jnp.allclose(out, ref, atol=1e-5, rtol=1e-5), "f32 path mismatch vs reference"

    # bf16 MXU-operand path (f32 accumulation) for v6e/v7x throughput.
    fwd_bf16 = jax.jit(functools.partial(recovery_forward, compute_dtype=jnp.bfloat16))
    out_bf16 = jax.block_until_ready(fwd_bf16(h, params))
    assert jnp.allclose(out_bf16, ref, atol=2e-2, rtol=2e-2), "bf16 path mismatch vs reference"

    print("KERNEL_OK")
</pallas_src>

<mosaic_0001>
module attributes {stable_mosaic.version = 11 : i64} {
  func.func @gru_chunk_kernel(%arg0: i32, %arg1: i32, %arg2: memref<8x8x384xf32, #tpu.memory_space<vmem>>, %arg3: memref<128x384xf32, #tpu.memory_space<vmem>>, %arg4: memref<1x128xf32, #tpu.memory_space<vmem>>, %arg5: memref<8x8x128xf32, #tpu.memory_space<vmem>>, %arg6: memref<8x128xf32, #tpu.memory_space<vmem>>) attributes {dimension_semantics = [#tpu.dimension_semantics<parallel>, #tpu.dimension_semantics<arbitrary>], iteration_bounds = array<i64: 1, 1>, scalar_prefetch = 0 : i64, scratch_operands = 1 : i64, tpu.core_type = #tpu.core_type<tc>, window_params = [{transform_indices = @transform_0, window_bounds = array<i64: 8, 8, 384>}, {pipeline_mode = #tpu.pipeline_mode<synchronous>, transform_indices = @transform_1, window_bounds = array<i64: 128, 384>}, {pipeline_mode = #tpu.pipeline_mode<synchronous>, transform_indices = @transform_2, window_bounds = array<i64: 1, 128>}, {transform_indices = @transform_3, window_bounds = array<i64: 8, 8, 128>}]} {
    %c0_i32 = arith.constant 0 : i32
    %0 = arith.cmpi eq, %arg1, %c0_i32 : i32
    %1 = arith.extui %0 : i1 to i32
    %c0_i32_0 = arith.constant 0 : i32
    %2 = arith.cmpi ne, %1, %c0_i32_0 : i32
    scf.if %2 {
      %cst = arith.constant 0.000000e+00 : f32
      %8 = vector.broadcast %cst : f32 to vector<8x128xf32>
      %c0_6 = arith.constant 0 : index
      %c0_7 = arith.constant 0 : index
      %9 = vector.load %arg6[%c0_6, %c0_7] : memref<8x128xf32, #tpu.memory_space<vmem>>, vector<8x128xf32>
      tpu.vector_store %arg6[%c0_6, %c0_7], %8 {strides = array<i32>} : memref<8x128xf32, #tpu.memory_space<vmem>>, vector<8x128xf32>,
    } else {
    }
    %c0 = arith.constant 0 : index
    %c0_1 = arith.constant 0 : index
    %3 = vector.load %arg3[%c0, %c0_1] : memref<128x384xf32, #tpu.memory_space<vmem>>, vector<128x384xf32>
    %c0_2 = arith.constant 0 : index
    %c0_3 = arith.constant 0 : index
    %4 = vector.load %arg4[%c0_2, %c0_3] : memref<1x128xf32, #tpu.memory_space<vmem>>, vector<1x128xf32>
    %5 = vector.shape_cast %4 : vector<1x128xf32> to vector<1x128xf32>
    %6 = vector.broadcast %5 : vector<1x128xf32> to vector<8x128xf32>
    %c0_i32_4 = arith.constant 0 : i32
    %c2_i32 = arith.constant 2 : i32
    %7 = arith.addi %c0_i32_4, %c2_i32 : i32
    %c1_i32 = arith.constant 1 : i32
    scf.for %arg7 = %c0_i32_4 to %7 step %c1_i32  : i32 {
      %c4_i32 = arith.constant 4 : i32
      %8 = arith.muli %arg7, %c4_i32 : i32
      %9 = tpu.assume_multiple %8, 4 : i32
      %c0_i32_6 = arith.constant 0 : i32
      %10 = arith.addi %9, %c0_i32_6 : i32
      %c0_7 = arith.constant 0 : index
      %c0_8 = arith.constant 0 : index
      %11 = vector.load %arg6[%c0_7, %c0_8] : memref<8x128xf32, #tpu.memory_space<vmem>>, vector<8x128xf32>
      %12 = arith.index_cast %10 : i32 to index
      %c0_9 = arith.constant 0 : index
      %c0_10 = arith.constant 0 : index
      %13 = vector.load %arg2[%12, %c0_9, %c0_10] : memref<8x8x384xf32, #tpu.memory_space<vmem>>, vector<1x8x384xf32>
      %14 = vector.shape_cast %13 : vector<1x8x384xf32> to vector<8x384xf32>
      %cst = arith.constant dense<0.000000e+00> : vector<8x384xf32>
      %15 = tpu.matmul %11, %3, %cst {dimension_numbers = #tpu.dot_dimension_numbers<[1], [0], [0], [1], [0, 0, 1, 1], [], []>} : vector<8x128xf32>, vector<128x384xf32>, vector<8x384xf32> -> vector<8x384xf32>
      %16 = vector.extract_strided_slice %14 {offsets = [0, 0], sizes = [8, 128], strides = [1, 1]} : vector<8x384xf32> to vector<8x128xf32>
      %17 = vector.extract_strided_slice %15 {offsets = [0, 0], sizes = [8, 128], strides = [1, 1]} : vector<8x384xf32> to vector<8x128xf32>
      %18 = arith.addf %16, %17 : vector<8x128xf32>
      %19 = arith.negf %18 : vector<8x128xf32>
      %20 = math.exp %19 : vector<8x128xf32>
      %cst_11 = arith.constant 1.000000e+00 : f32
      %21 = vector.broadcast %cst_11 : f32 to vector<8x128xf32>
      %22 = arith.addf %21, %20 : vector<8x128xf32>
      %23 = arith.divf %21, %22 : vector<8x128xf32>
      %24 = vector.extract_strided_slice %14 {offsets = [0, 128], sizes = [8, 128], strides = [1, 1]} : vector<8x384xf32> to vector<8x128xf32>
      %25 = vector.extract_strided_slice %15 {offsets = [0, 128], sizes = [8, 128], strides = [1, 1]} : vector<8x384xf32> to vector<8x128xf32>
      %26 = arith.addf %24, %25 : vector<8x128xf32>
      %27 = arith.negf %26 : vector<8x128xf32>
      %28 = math.exp %27 : vector<8x128xf32>
      %cst_12 = arith.constant 1.000000e+00 : f32
      %29 = vector.broadcast %cst_12 : f32 to vector<8x128xf32>
      %30 = arith.addf %29, %28 : vector<8x128xf32>
      %31 = arith.divf %29, %30 : vector<8x128xf32>
      %32 = vector.extract_strided_slice %14 {offsets = [0, 256], sizes = [8, 128], strides = [1, 1]} : vector<8x384xf32> to vector<8x128xf32>
      %33 = vector.extract_strided_slice %15 {offsets = [0, 256], sizes = [8, 128], strides = [1, 1]} : vector<8x384xf32> to vector<8x128xf32>
      %34 = arith.addf %33, %6 : vector<8x128xf32>
      %35 = arith.mulf %23, %34 : vector<8x128xf32>
      %36 = arith.addf %32, %35 : vector<8x128xf32>
      %37 = math.tanh %36 : vector<8x128xf32>
      %38 = arith.subf %11, %37 : vector<8x128xf32>
      %39 = arith.mulf %31, %38 : vector<8x128xf32>
      %40 = arith.addf %37, %39 : vector<8x128xf32>
      %c0_13 = arith.constant 0 : index
      %c0_14 = arith.constant 0 : index
      %41 = vector.load %arg6[%c0_13, %c0_14] : memref<8x128xf32, #tpu.memory_space<vmem>>, vector<8x128xf32>
      tpu.vector_store %arg6[%c0_13, %c0_14], %40 {strides = array<i32>} : memref<8x128xf32, #tpu.memory_space<vmem>>, vector<8x128xf32>,
      %42 = vector.shape_cast %40 : vector<8x128xf32> to vector<8x1x128xf32>
      %c0_15 = arith.constant 0 : index
      %43 = arith.index_cast %10 : i32 to index
      %c0_16 = arith.constant 0 : index
      %44 = vector.load %arg5[%c0_15, %43, %c0_16] : memref<8x8x128xf32, #tpu.memory_space<vmem>>, vector<8x1x128xf32>
      tpu.vector_store %arg5[%c0_15, %43, %c0_16], %42 {strides = array<i32>} : memref<8x8x128xf32, #tpu.memory_space<vmem>>, vector<8x1x128xf32>,
      %c1_i32_17 = arith.constant 1 : i32
      %45 = arith.addi %9, %c1_i32_17 : i32
      %c0_18 = arith.constant 0 : index
      %c0_19 = arith.constant 0 : index
      %46 = vector.load %arg6[%c0_18, %c0_19] : memref<8x128xf32, #tpu.memory_space<vmem>>, vector<8x128xf32>
      %47 = arith.index_cast %45 : i32 to index
      %c0_20 = arith.constant 0 : index
      %c0_21 = arith.constant 0 : index
      %48 = vector.load %arg2[%47, %c0_20, %c0_21] : memref<8x8x384xf32, #tpu.memory_space<vmem>>, vector<1x8x384xf32>
      %49 = vector.shape_cast %48 : vector<1x8x384xf32> to vector<8x384xf32>
      %cst_22 = arith.constant dense<0.000000e+00> : vector<8x384xf32>
      %50 = tpu.matmul %46, %3, %cst_22 {dimension_numbers = #tpu.dot_dimension_numbers<[1], [0], [0], [1], [0, 0, 1, 1], [], []>} : vector<8x128xf32>, vector<128x384xf32>, vector<8x384xf32> -> vector<8x384xf32>
      %51 = vector.extract_strided_slice %49 {offsets = [0, 0], sizes = [8, 128], strides = [1, 1]} : vector<8x384xf32> to vector<8x128xf32>
      %52 = vector.extract_strided_slice %50 {offsets = [0, 0], sizes = [8, 128], strides = [1, 1]} : vector<8x384xf32> to vector<8x128xf32>
      %53 = arith.addf %51, %52 : vector<8x128xf32>
      %54 = arith.negf %53 : vector<8x128xf32>
      %55 = math.exp %54 : vector<8x128xf32>
      %cst_23 = arith.constant 1.000000e+00 : f32
      %56 = vector.broadcast %cst_23 : f32 to vector<8x128xf32>
      %57 = arith.addf %56, %55 : vector<8x128xf32>
      %58 = arith.divf %56, %57 : vector<8x128xf32>
      %59 = vector.extract_strided_slice %49 {offsets = [0, 128], sizes = [8, 128], strides = [1, 1]} : vector<8x384xf32> to vector<8x128xf32>
      %60 = vector.extract_strided_slice %50 {offsets = [0, 128], sizes = [8, 128], strides = [1, 1]} : vector<8x384xf32> to vector<8x128xf32>
      %61 = arith.addf %59, %60 : vector<8x128xf32>
      %62 = arith.negf %61 : vector<8x128xf32>
      %63 = math.exp %62 : vector<8x128xf32>
      %cst_24 = arith.constant 1.000000e+00 : f32
      %64 = vector.broadcast %cst_24 : f32 to vector<8x128xf32>
      %65 = arith.addf %64, %63 : vector<8x128xf32>
      %66 = arith.divf %64, %65 : vector<8x128xf32>
      %67 = vector.extract_strided_slice %49 {offsets = [0, 256], sizes = [8, 128], strides = [1, 1]} : vector<8x384xf32> to vector<8x128xf32>
      %68 = vector.extract_strided_slice %50 {offsets = [0, 256], sizes = [8, 128], strides = [1, 1]} : vector<8x384xf32> to vector<8x128xf32>
      %69 = arith.addf %68, %6 : vector<8x128xf32>
      %70 = arith.mulf %58, %69 : vector<8x128xf32>
      %71 = arith.addf %67, %70 : vector<8x128xf32>
      %72 = math.tanh %71 : vector<8x128xf32>
      %73 = arith.subf %46, %72 : vector<8x128xf32>
      %74 = arith.mulf %66, %73 : vector<8x128xf32>
      %75 = arith.addf %72, %74 : vector<8x128xf32>
      %c0_25 = arith.constant 0 : index
      %c0_26 = arith.constant 0 : index
      %76 = vector.load %arg6[%c0_25, %c0_26] : memref<8x128xf32, #tpu.memory_space<vmem>>, vector<8x128xf32>
      tpu.vector_store %arg6[%c0_25, %c0_26], %75 {strides = array<i32>} : memref<8x128xf32, #tpu.memory_space<vmem>>, vector<8x128xf32>,
      %77 = vector.shape_cast %75 : vector<8x128xf32> to vector<8x1x128xf32>
      %c0_27 = arith.constant 0 : index
      %78 = arith.index_cast %45 : i32 to index
      %c0_28 = arith.constant 0 : index
      %79 = vector.load %arg5[%c0_27, %78, %c0_28] : memref<8x8x128xf32, #tpu.memory_space<vmem>>, vector<8x1x128xf32>
      tpu.vector_store %arg5[%c0_27, %78, %c0_28], %77 {strides = array<i32>} : memref<8x8x128xf32, #tpu.memory_space<vmem>>, vector<8x1x128xf32>,
      %c2_i32_29 = arith.constant 2 : i32
      %80 = arith.addi %9, %c2_i32_29 : i32
      %c0_30 = arith.constant 0 : index
      %c0_31 = arith.constant 0 : index
      %81 = vector.load %arg6[%c0_30, %c0_31] : memref<8x128xf32, #tpu.memory_space<vmem>>, vector<8x128xf32>
      %82 = arith.index_cast %80 : i32 to index
      %c0_32 = arith.constant 0 : index
      %c0_33 = arith.constant 0 : index
      %83 = vector.load %arg2[%82, %c0_32, %c0_33] : memref<8x8x384xf32, #tpu.memory_space<vmem>>, vector<1x8x384xf32>
      %84 = vector.shape_cast %83 : vector<1x8x384xf32> to vector<8x384xf32>
      %cst_34 = arith.constant dense<0.000000e+00> : vector<8x384xf32>
      %85 = tpu.matmul %81, %3, %cst_34 {dimension_numbers = #tpu.dot_dimension_numbers<[1], [0], [0], [1], [0, 0, 1, 1], [], []>} : vector<8x128xf32>, vector<128x384xf32>, vector<8x384xf32> -> vector<8x384xf32>
      %86 = vector.extract_strided_slice %84 {offsets = [0, 0], sizes = [8, 128], strides = [1, 1]} : vector<8x384xf32> to vector<8x128xf32>
      %87 = vector.extract_strided_slice %85 {offsets = [0, 0], sizes = [8, 128], strides = [1, 1]} : vector<8x384xf32> to vector<8x128xf32>
      %88 = arith.addf %86, %87 : vector<8x128xf32>
      %89 = arith.negf %88 : vector<8x128xf32>
      %90 = math.exp %89 : vector<8x128xf32>
      %cst_35 = arith.constant 1.000000e+00 : f32
      %91 = vector.broadcast %cst_35 : f32 to vector<8x128xf32>
      %92 = arith.addf %91, %90 : vector<8x128xf32>
      %93 = arith.divf %91, %92 : vector<8x128xf32>
      %94 = vector.extract_strided_slice %84 {offsets = [0, 128], sizes = [8, 128], strides = [1, 1]} : vector<8x384xf32> to vector<8x128xf32>
      %95 = vector.extract_strided_slice %85 {offsets = [0, 128], sizes = [8, 128], strides = [1, 1]} : vector<8x384xf32> to vector<8x128xf32>
      %96 = arith.addf %94, %95 : vector<8x128xf32>
      %97 = arith.negf %96 : vector<8x128xf32>
      %98 = math.exp %97 : vector<8x128xf32>
      %cst_36 = arith.constant 1.000000e+00 : f32
      %99 = vector.broadcast %cst_36 : f32 to vector<8x128xf32>
      %100 = arith.addf %99, %98 : vector<8x128xf32>
      %101 = arith.divf %99, %100 : vector<8x128xf32>
      %102 = vector.extract_strided_slice %84 {offsets = [0, 256], sizes = [8, 128], strides = [1, 1]} : vector<8x384xf32> to vector<8x128xf32>
      %103 = vector.extract_strided_slice %85 {offsets = [0, 256], sizes = [8, 128], strides = [1, 1]} : vector<8x384xf32> to vector<8x128xf32>
      %104 = arith.addf %103, %6 : vector<8x128xf32>
      %105 = arith.mulf %93, %104 : vector<8x128xf32>
      %106 = arith.addf %102, %105 : vector<8x128xf32>
      %107 = math.tanh %106 : vector<8x128xf32>
      %108 = arith.subf %81, %107 : vector<8x128xf32>
      %109 = arith.mulf %101, %108 : vector<8x128xf32>
      %110 = arith.addf %107, %109 : vector<8x128xf32>
      %c0_37 = arith.constant 0 : index
      %c0_38 = arith.constant 0 : index
      %111 = vector.load %arg6[%c0_37, %c0_38] : memref<8x128xf32, #tpu.memory_space<vmem>>, vector<8x128xf32>
      tpu.vector_store %arg6[%c0_37, %c0_38], %110 {strides = array<i32>} : memref<8x128xf32, #tpu.memory_space<vmem>>, vector<8x128xf32>,
      %112 = vector.shape_cast %110 : vector<8x128xf32> to vector<8x1x128xf32>
      %c0_39 = arith.constant 0 : index
      %113 = arith.index_cast %80 : i32 to index
      %c0_40 = arith.constant 0 : index
      %114 = vector.load %arg5[%c0_39, %113, %c0_40] : memref<8x8x128xf32, #tpu.memory_space<vmem>>, vector<8x1x128xf32>
      tpu.vector_store %arg5[%c0_39, %113, %c0_40], %112 {strides = array<i32>} : memref<8x8x128xf32, #tpu.memory_space<vmem>>, vector<8x1x128xf32>,
      %c3_i32 = arith.constant 3 : i32
      %115 = arith.addi %9, %c3_i32 : i32
      %c0_41 = arith.constant 0 : index
      %c0_42 = arith.constant 0 : index
      %116 = vector.load %arg6[%c0_41, %c0_42] : memref<8x128xf32, #tpu.memory_space<vmem>>, vector<8x128xf32>
      %117 = arith.index_cast %115 : i32 to index
      %c0_43 = arith.constant 0 : index
      %c0_44 = arith.constant 0 : index
      %118 = vector.load %arg2[%117, %c0_43, %c0_44] : memref<8x8x384xf32, #tpu.memory_space<vmem>>, vector<1x8x384xf32>
      %119 = vector.shape_cast %118 : vector<1x8x384xf32> to vector<8x384xf32>
      %cst_45 = arith.constant dense<0.000000e+00> : vector<8x384xf32>
      %120 = tpu.matmul %116, %3, %cst_45 {dimension_numbers = #tpu.dot_dimension_numbers<[1], [0], [0], [1], [0, 0, 1, 1], [], []>} : vector<8x128xf32>, vector<128x384xf32>, vector<8x384xf32> -> vector<8x384xf32>
      %121 = vector.extract_strided_slice %119 {offsets = [0, 0], sizes = [8, 128], strides = [1, 1]} : vector<8x384xf32> to vector<8x128xf32>
      %122 = vector.extract_strided_slice %120 {offsets = [0, 0], sizes = [8, 128], strides = [1, 1]} : vector<8x384xf32> to vector<8x128xf32>
      %123 = arith.addf %121, %122 : vector<8x128xf32>
      %124 = arith.negf %123 : vector<8x128xf32>
      %125 = math.exp %124 : vector<8x128xf32>
      %cst_46 = arith.constant 1.000000e+00 : f32
      %126 = vector.broadcast %cst_46 : f32 to vector<8x128xf32>
      %127 = arith.addf %126, %125 : vector<8x128xf32>
      %128 = arith.divf %126, %127 : vector<8x128xf32>
      %129 = vector.extract_strided_slice %119 {offsets = [0, 128], sizes = [8, 128], strides = [1, 1]} : vector<8x384xf32> to vector<8x128xf32>
      %130 = vector.extract_strided_slice %120 {offsets = [0, 128], sizes = [8, 128], strides = [1, 1]} : vector<8x384xf32> to vector<8x128xf32>
      %131 = arith.addf %129, %130 : vector<8x128xf32>
      %132 = arith.negf %131 : vector<8x128xf32>
      %133 = math.exp %132 : vector<8x128xf32>
      %cst_47 = arith.constant 1.000000e+00 : f32
      %134 = vector.broadcast %cst_47 : f32 to vector<8x128xf32>
      %135 = arith.addf %134, %133 : vector<8x128xf32>
      %136 = arith.divf %134, %135 : vector<8x128xf32>
      %137 = vector.extract_strided_slice %119 {offsets = [0, 256], sizes = [8, 128], strides = [1, 1]} : vector<8x384xf32> to vector<8x128xf32>
      %138 = vector.extract_strided_slice %120 {offsets = [0, 256], sizes = [8, 128], strides = [1, 1]} : vector<8x384xf32> to vector<8x128xf32>
      %139 = arith.addf %138, %6 : vector<8x128xf32>
      %140 = arith.mulf %128, %139 : vector<8x128xf32>
      %141 = arith.addf %137, %140 : vector<8x128xf32>
      %142 = math.tanh %141 : vector<8x128xf32>
      %143 = arith.subf %116, %142 : vector<8x128xf32>
      %144 = arith.mulf %136, %143 : vector<8x128xf32>
      %145 = arith.addf %142, %144 : vector<8x128xf32>
      %c0_48 = arith.constant 0 : index
      %c0_49 = arith.constant 0 : index
      %146 = vector.load %arg6[%c0_48, %c0_49] : memref<8x128xf32, #tpu.memory_space<vmem>>, vector<8x128xf32>
      tpu.vector_store %arg6[%c0_48, %c0_49], %145 {strides = array<i32>} : memref<8x128xf32, #tpu.memory_space<vmem>>, vector<8x128xf32>,
      %147 = vector.shape_cast %145 : vector<8x128xf32> to vector<8x1x128xf32>
      %c0_50 = arith.constant 0 : index
      %148 = arith.index_cast %115 : i32 to index
      %c0_51 = arith.constant 0 : index
      %149 = vector.load %arg5[%c0_50, %148, %c0_51] : memref<8x8x128xf32, #tpu.memory_space<vmem>>, vector<8x1x128xf32>
      tpu.vector_store %arg5[%c0_50, %148, %c0_51], %147 {strides = array<i32>} : memref<8x8x128xf32, #tpu.memory_space<vmem>>, vector<8x1x128xf32>,
    }
    %c2_i32_5 = arith.constant 2 : i32
    return
  }
  func.func @transform_0(%arg0: i32, %arg1: i32) -> (i32, i32, i32) {
    %c0_i32 = arith.constant 0 : i32
    %c0_i32_0 = arith.constant 0 : i32
    return %arg1, %arg0, %c0_i32 : i32, i32, i32
  }
  func.func @transform_1(%arg0: i32, %arg1: i32) -> (i32, i32) {
    %c0_i32 = arith.constant 0 : i32
    %c0_i32_0 = arith.constant 0 : i32
    %c0_i32_1 = arith.constant 0 : i32
    return %c0_i32, %c0_i32_0 : i32, i32
  }
  func.func @transform_2(%arg0: i32, %arg1: i32) -> (i32, i32) {
    %c0_i32 = arith.constant 0 : i32
    %c0_i32_0 = arith.constant 0 : i32
    %c0_i32_1 = arith.constant 0 : i32
    return %c0_i32, %c0_i32_0 : i32, i32
  }
  func.func @transform_3(%arg0: i32, %arg1: i32) -> (i32, i32, i32) {
    %c0_i32 = arith.constant 0 : i32
    %c0_i32_0 = arith.constant 0 : i32
    return %arg0, %arg1, %c0_i32 : i32, i32, i32
  }
}

module attributes {stable_mosaic.version = 11 : i64} {
  func.func @input_proj_kernel(%arg0: i32, %arg1: memref<64x16xf32, #tpu.memory_space<vmem>>, %arg2: memref<16x128xf32, #tpu.memory_space<vmem>>, %arg3: memref<1x128xf32, #tpu.memory_space<vmem>>, %arg4: memref<128x384xf32, #tpu.memory_space<vmem>>, %arg5: memref<1x384xf32, #tpu.memory_space<vmem>>, %arg6: memref<64x384xf32, #tpu.memory_space<vmem>>) attributes {dimension_semantics = [#tpu.dimension_semantics<parallel>], iteration_bounds = array<i64: 1>, scalar_prefetch = 0 : i64, scratch_operands = 0 : i64, tpu.core_type = #tpu.core_type<tc>, window_params = [{transform_indices = @transform_0, window_bounds = array<i64: 64, 16>}, {pipeline_mode = #tpu.pipeline_mode<synchronous>, transform_indices = @transform_1, window_bounds = array<i64: 16, 128>}, {pipeline_mode = #tpu.pipeline_mode<synchronous>, transform_indices = @transform_2, window_bounds = array<i64: 1, 128>}, {pipeline_mode = #tpu.pipeline_mode<synchronous>, transform_indices = @transform_3, window_bounds = array<i64: 128, 384>}, {pipeline_mode = #tpu.pipeline_mode<synchronous>, transform_indices = @transform_4, window_bounds = array<i64: 1, 384>}, {transform_indices = @transform_5, window_bounds = array<i64: 64, 384>}]} {
    %c0 = arith.constant 0 : index
    %c0_0 = arith.constant 0 : index
    %0 = vector.load %arg1[%c0, %c0_0] : memref<64x16xf32, #tpu.memory_space<vmem>>, vector<64x16xf32>
    %c0_1 = arith.constant 0 : index
    %c0_2 = arith.constant 0 : index
    %1 = vector.load %arg2[%c0_1, %c0_2] : memref<16x128xf32, #tpu.memory_space<vmem>>, vector<16x128xf32>
    %cst = arith.constant dense<0.000000e+00> : vector<64x128xf32>
    %2 = tpu.matmul %0, %1, %cst {dimension_numbers = #tpu.dot_dimension_numbers<[1], [0], [0], [1], [0, 0, 1, 1], [], []>} : vector<64x16xf32>, vector<16x128xf32>, vector<64x128xf32> -> vector<64x128xf32>
    %c0_3 = arith.constant 0 : index
    %c0_4 = arith.constant 0 : index
    %3 = vector.load %arg3[%c0_3, %c0_4] : memref<1x128xf32, #tpu.memory_space<vmem>>, vector<1x128xf32>
    %4 = vector.broadcast %3 : vector<1x128xf32> to vector<64x128xf32>
    %5 = arith.addf %2, %4 : vector<64x128xf32>
    %c0_5 = arith.constant 0 : index
    %c0_6 = arith.constant 0 : index
    %6 = vector.load %arg4[%c0_5, %c0_6] : memref<128x384xf32, #tpu.memory_space<vmem>>, vector<128x384xf32>
    %cst_7 = arith.constant dense<0.000000e+00> : vector<64x384xf32>
    %7 = tpu.matmul %5, %6, %cst_7 {dimension_numbers = #tpu.dot_dimension_numbers<[1], [0], [0], [1], [0, 0, 1, 1], [], []>} : vector<64x128xf32>, vector<128x384xf32>, vector<64x384xf32> -> vector<64x384xf32>
    %c0_8 = arith.constant 0 : index
    %c0_9 = arith.constant 0 : index
    %8 = vector.load %arg5[%c0_8, %c0_9] : memref<1x384xf32, #tpu.memory_space<vmem>>, vector<1x384xf32>
    %9 = vector.broadcast %8 : vector<1x384xf32> to vector<64x384xf32>
    %10 = arith.addf %7, %9 : vector<64x384xf32>
    %c0_10 = arith.constant 0 : index
    %c0_11 = arith.constant 0 : index
    %11 = vector.load %arg6[%c0_10, %c0_11] : memref<64x384xf32, #tpu.memory_space<vmem>>, vector<64x384xf32>
    tpu.vector_store %arg6[%c0_10, %c0_11], %10 {strides = array<i32>} : memref<64x384xf32, #tpu.memory_space<vmem>>, vector<64x384xf32>,
    return
  }
  func.func @transform_0(%arg0: i32) -> (i32, i32) {
    %c0_i32 = arith.constant 0 : i32
    %c0_i32_0 = arith.constant 0 : i32
    return %arg0, %c0_i32 : i32, i32
  }
  func.func @transform_1(%arg0: i32) -> (i32, i32) {
    %c0_i32 = arith.constant 0 : i32
    %c0_i32_0 = arith.constant 0 : i32
    %c0_i32_1 = arith.constant 0 : i32
    return %c0_i32, %c0_i32_0 : i32, i32
  }
  func.func @transform_2(%arg0: i32) -> (i32, i32) {
    %c0_i32 = arith.constant 0 : i32
    %c0_i32_0 = arith.constant 0 : i32
    %c0_i32_1 = arith.constant 0 : i32
    return %c0_i32, %c0_i32_0 : i32, i32
  }
  func.func @transform_3(%arg0: i32) -> (i32, i32) {
    %c0_i32 = arith.constant 0 : i32
    %c0_i32_0 = arith.constant 0 : i32
    %c0_i32_1 = arith.constant 0 : i32
    return %c0_i32, %c0_i32_0 : i32, i32
  }
  func.func @transform_4(%arg0: i32) -> (i32, i32) {
    %c0_i32 = arith.constant 0 : i32
    %c0_i32_0 = arith.constant 0 : i32
    %c0_i32_1 = arith.constant 0 : i32
    return %c0_i32, %c0_i32_0 : i32, i32
  }
  func.func @transform_5(%arg0: i32) -> (i32, i32) {
    %c0_i32 = arith.constant 0 : i32
    %c0_i32_0 = arith.constant 0 : i32
    return %arg0, %c0_i32 : i32, i32
  }
}

</mosaic_0001>

<bundles_post_ra>
// kernel: recovery_forward.3
= control target key start
LH: loop header
LB: loop body
LE: loop exit
PB: predicated region body
PF: predicated region fallthrough
CT: control target
= control target key end

     0   :  { %v1405_v0 = vmov 0.0   ;;  %s1674_s29 = smov 0   ;;  %s2057_s0 = inlined_call_operand.vmem [shape: f32[8,8,384], index: 0, kind: input, shape index: {}]   ;;  %s2058_s1 = inlined_call_operand.vmem [shape: f32[128,384], index: 1, kind: input, shape index: {}]   ;;  %s2059_s3 = inlined_call_operand.vmem [shape: f32[8,8,128], index: 3, kind: output, shape index: {}]   ;;  %s2060_s2 = inlined_call_operand.vmem [shape: f32[1,128], index: 2, kind: input, shape index: {}]  }
   0x1   :  { %18 = vst [vmem:[#allocation2] sm:$0xff] %v1405_v0  ;;  %v1432_v1 = vld [vmem:[%s2058_s1] sm:$0xff]  ;;  %v1437_v2 = vld [vmem:[%s2058_s1 + $0x8] sm:$0xff]  ;;  %v1442_v3 = vld [vmem:[%s2058_s1 + $0x10] sm:$0xff] }
   0x2   :  { %2073 = vst [vmem:[#allocation3_spill] sm:$0xff] %v1432_v1  ;;  %2074 = vst [vmem:[#allocation4_spill] sm:$0xff] %v1437_v2  ;;  %v1447_v4 = vld [vmem:[%s2058_s1 + $0x18] sm:$0xff]  ;;  %v1452_v5 = vld [vmem:[%s2058_s1 + $0x20] sm:$0xff] }
   0x3   :  { %2075 = vst [vmem:[#allocation5_spill] sm:$0xff] %v1442_v3  ;;  %2076 = vst [vmem:[#allocation6_spill] sm:$0xff] %v1447_v4  ;;  %v1457_v6 = vld [vmem:[%s2058_s1 + $0x28] sm:$0xff]  ;;  %v1462_v7 = vld [vmem:[%s2058_s1 + $0x30] sm:$0xff] }
   0x4   :  { %2077 = vst [vmem:[#allocation7_spill] sm:$0xff] %v1452_v5  ;;  %2078 = vst [vmem:[#allocation8_spill] sm:$0xff] %v1457_v6  ;;  %v1467_v8 = vld [vmem:[%s2058_s1 + $0x38] sm:$0xff]  ;;  %v1472_v9 = vld [vmem:[%s2058_s1 + $0x40] sm:$0xff] }
   0x5   :  { %v1477_v10 = vld [vmem:[%s2058_s1 + $0x48] sm:$0xff]  ;;  %v1482_v11 = vld [vmem:[%s2058_s1 + $0x50] sm:$0xff]  ;;  %v1487_v12 = vld [vmem:[%s2058_s1 + $0x58] sm:$0xff] }
   0x6   :  { %v1492_v13 = vld [vmem:[%s2058_s1 + $0x60] sm:$0xff]  ;;  %v1497_v14 = vld [vmem:[%s2058_s1 + $0x68] sm:$0xff]  ;;  %v1502_v15 = vld [vmem:[%s2058_s1 + $0x70] sm:$0xff] }
   0x7   :  { %v1507_v16 = vld [vmem:[%s2058_s1 + $0x78] sm:$0xff]  ;;  %v1512_v17 = vld [vmem:[%s2058_s1 + $0x80] sm:$0xff]  ;;  %v1517_v18 = vld [vmem:[%s2058_s1 + $0x88] sm:$0xff] }
   0x8   :  { %v1522_v19 = vld [vmem:[%s2058_s1 + $0x90] sm:$0xff]  ;;  %v1527_v20 = vld [vmem:[%s2058_s1 + $0x98] sm:$0xff]  ;;  %v1532_v21 = vld [vmem:[%s2058_s1 + $0xa0] sm:$0xff] }
   0x9   :  { %v1537_v22 = vld [vmem:[%s2058_s1 + $0xa8] sm:$0xff]  ;;  %v1542_v23 = vld [vmem:[%s2058_s1 + $0xb0] sm:$0xff]  ;;  %v1547_v24 = vld [vmem:[%s2058_s1 + $0xb8] sm:$0xff] }
   0xa   :  { %v1552_v25 = vld [vmem:[%s2058_s1 + $0xc0] sm:$0xff]  ;;  %v1557_v26 = vld [vmem:[%s2058_s1 + $0xc8] sm:$0xff]  ;;  %v1562_v27 = vld [vmem:[%s2058_s1 + $0xd0] sm:$0xff] }
   0xb   :  { %v1567_v28 = vld [vmem:[%s2058_s1 + $0xd8] sm:$0xff]  ;;  %v1572_v29 = vld [vmem:[%s2058_s1 + $0xe0] sm:$0xff]  ;;  %v1577_v30 = vld [vmem:[%s2058_s1 + $0xe8] sm:$0xff] }
   0xc   :  { %v1582_v31 = vld [vmem:[%s2058_s1 + $0xf0] sm:$0xff]  ;;  %v1587_v32 = vld [vmem:[%s2058_s1 + $0xf8] sm:$0xff]  ;;  %v1592_v33 = vld [vmem:[%s2058_s1 + $0x100] sm:$0xff] }
   0xd   :  { %v1597_v34 = vld [vmem:[%s2058_s1 + $0x108] sm:$0xff]  ;;  %v1602_v35 = vld [vmem:[%s2058_s1 + $0x110] sm:$0xff]  ;;  %v1607_v36 = vld [vmem:[%s2058_s1 + $0x118] sm:$0xff] }
   0xe   :  { %v1612_v37 = vld [vmem:[%s2058_s1 + $0x120] sm:$0xff]  ;;  %v1617_v38 = vld [vmem:[%s2058_s1 + $0x128] sm:$0xff]  ;;  %v1622_v39 = vld [vmem:[%s2058_s1 + $0x130] sm:$0xff] }
   0xf   :  { %v1627_v40 = vld [vmem:[%s2058_s1 + $0x138] sm:$0xff]  ;;  %v1632_v41 = vld [vmem:[%s2058_s1 + $0x140] sm:$0xff]  ;;  %v1637_v42 = vld [vmem:[%s2058_s1 + $0x148] sm:$0xff] }
  0x10   :  { %v1642_v43 = vld [vmem:[%s2058_s1 + $0x150] sm:$0xff]  ;;  %v1647_v44 = vld [vmem:[%s2058_s1 + $0x158] sm:$0xff]  ;;  %v1652_v45 = vld [vmem:[%s2058_s1 + $0x160] sm:$0xff] }
  0x11   :  { %v1657_v46 = vld [vmem:[%s2058_s1 + $0x168] sm:$0xff]  ;;  %v1662_v47 = vld [vmem:[%s2058_s1 + $0x170] sm:$0xff]  ;;  %v1667_v48 = vld [vmem:[%s2058_s1 + $0x178] sm:$0xff] }
  0x12   :  { %2079 = vst [vmem:[#allocation9_spill] sm:$0xff] %v1662_v47  ;;  %v1672_v49 = vld [vmem:[%s2060_s2] ss:$0 sm:$0xff] }
  0x13   :  { %2080 = vst [vmem:[#allocation10_spill] sm:$0xff] %v1672_v49 }
  0x14 LB: > { %v2081_v5 = vld [vmem:[#allocation7_spill] sm:$0xff]  ;;  %v2082_v4 = vld [vmem:[#allocation6_spill] sm:$0xff]  ;;  %v2083_v6 = vld [vmem:[#allocation8_spill] sm:$0xff]  ;;  %v2061_v50 = vmov 0.0   ;;  %vm1407_vm0 = vmmov 0   ;;  %s1124_s1 = smul.u32 96, %s1403_s29  ;;  %s1403_s29 = sphi %s1674_s29, %s79_s29  }
  0x15   : > { %v2084_v2 = vld [vmem:[#allocation4_spill] sm:$0xff]  ;;  %v2085_v1 = vld [vmem:[#allocation3_spill] sm:$0xff]  ;;  %v2086_v3 = vld [vmem:[#allocation5_spill] sm:$0xff]  ;;  %1205 = vmatprep.subr.mxu1 %v2061_v50  ;;  %152 = vmatprep.mubr.f32.mxu0 %v2061_v50  ;;  %s1067_s5 = sshll.u32 %s1403_s29, 2  ;;  %s79_s29 = sadd.s32 1, %s1403_s29  }
  0x16   : > { %1206 = vmatpush3.msra.mxu1 %v1667_v48  ;;  %v1737_v51 = vld [vmem:[#allocation2] sm:$0xff]  ;;  %1237 = vmatprep.mubr.msk.f32.mxu1 %vm1407_vm0, %v2061_v50  ;;  %s1823_s4 = scalar_lea.vmem %s2057_s0, %s1124_s1  ;;  %s1838_s8 = scalar_lea.vmem %s2059_s3, %s1067_s5 }
  0x17   : > { %1207 = vmatprep.subr.mxu1 %v2061_v50  ;;  %v85_v52 = vld [vmem:[%s1823_s4] sm:$0xff]  ;;  %v86_v58 = vld [vmem:[%s1823_s4 + $0x8] sm:$0xff]  ;;  %p76_p0 = scmp.ge.s32.totalorder %s79_s29, 2  }
  0x18   : > { %1208 = vmatpush3.msra.mxu1 %v1652_v45 }
  0x19   : > { %v2087_v47 = vld [vmem:[#allocation9_spill] sm:$0xff]  ;;  %1209 = vmatprep.subr.mxu1 %v2061_v50 }
  0x1a   : > { %88 = vmatprep.subr.mxu0 %v2087_v47  ;;  %1210 = vmatpush3.msra.mxu1 %v1637_v42  ;;  %v2088_v49 = vld [vmem:[#allocation10_spill] sm:$0xff] }
  0x1b   : > { %89 = vmatpush1.msra.mxu0 %v1657_v46  ;;  %1211 = vmatprep.subr.mxu1 %v2061_v50 }
  0x1c   : > { %90 = vmatprep.subr.mxu0 %v1647_v44  ;;  %1212 = vmatpush3.msra.mxu1 %v1622_v39 }
  0x1d   : > { %91 = vmatpush1.msra.mxu0 %v1642_v43  ;;  %1213 = vmatprep.subr.mxu1 %v2061_v50 }
  0x1e   : > { %92 = vmatprep.subr.mxu0 %v1632_v41  ;;  %1214 = vmatpush3.msra.mxu1 %v1607_v36 }
  0x1f   : > { %93 = vmatpush1.msra.mxu0 %v1627_v40  ;;  %1215 = vmatprep.subr.mxu1 %v2061_v50 }
  0x20   : > { %94 = vmatprep.subr.mxu0 %v1617_v38  ;;  %1216 = vmatpush3.msra.mxu1 %v1592_v33 }
  0x21   : > { %95 = vmatpush1.msra.mxu0 %v1612_v37  ;;  %1217 = vmatprep.subr.mxu1 %v2061_v50 }
  0x22   : > { %96 = vmatprep.subr.mxu0 %v1602_v35  ;;  %1218 = vmatpush3.msra.mxu1 %v1577_v30 }
  0x23   : > { %97 = vmatpush1.msra.mxu0 %v1597_v34  ;;  %1219 = vmatprep.subr.mxu1 %v2061_v50 }
  0x24   : > { %98 = vmatprep.subr.mxu0 %v1587_v32  ;;  %1220 = vmatpush3.msra.mxu1 %v1562_v27 }
  0x25   : > { %99 = vmatpush1.msra.mxu0 %v1582_v31  ;;  %1221 = vmatprep.subr.mxu1 %v2061_v50 }
  0x26   : > { %100 = vmatprep.subr.mxu0 %v1572_v29  ;;  %1222 = vmatpush3.msra.mxu1 %v1547_v24 }
  0x27   : > { %101 = vmatpush1.msra.mxu0 %v1567_v28  ;;  %1223 = vmatprep.subr.mxu1 %v2061_v50 }
  0x28   : > { %102 = vmatprep.subr.mxu0 %v1557_v26  ;;  %1224 = vmatpush3.msra.mxu1 %v1532_v21 }
  0x29   : > { %103 = vmatpush1.msra.mxu0 %v1552_v25  ;;  %1225 = vmatprep.subr.mxu1 %v2061_v50 }
  0x2a   : > { %104 = vmatprep.subr.mxu0 %v1542_v23  ;;  %1226 = vmatpush3.msra.mxu1 %v1517_v18 }
  0x2b   : > { %105 = vmatpush1.msra.mxu0 %v1537_v22  ;;  %1227 = vmatprep.subr.mxu1 %v2061_v50 }
  0x2c   : > { %106 = vmatprep.subr.mxu0 %v1527_v20  ;;  %1228 = vmatpush3.msra.mxu1 %v1502_v15 }
  0x2d   : > { %107 = vmatpush1.msra.mxu0 %v1522_v19  ;;  %1229 = vmatprep.subr.mxu1 %v2061_v50 }
  0x2e   : > { %108 = vmatprep.subr.mxu0 %v1512_v17  ;;  %1230 = vmatpush3.msra.mxu1 %v1487_v12 }
  0x2f   : > { %109 = vmatpush1.msra.mxu0 %v1507_v16  ;;  %1231 = vmatprep.subr.mxu1 %v2061_v50 }
  0x30   : > { %110 = vmatprep.subr.mxu0 %v1497_v14  ;;  %1232 = vmatpush3.msra.mxu1 %v1472_v9 }
  0x31   : > { %111 = vmatpush1.msra.mxu0 %v1492_v13  ;;  %1233 = vmatprep.subr.mxu1 %v2061_v50 }
  0x32   : > { %112 = vmatprep.subr.mxu0 %v1482_v11  ;;  %1234 = vmatpush3.msra.mxu1 %v2083_v6 }
  0x33   : > { %113 = vmatpush1.msra.mxu0 %v1477_v10  ;;  %1235 = vmatprep.subr.mxu1 %v2061_v50 }
  0x34   : > { %114 = vmatprep.subr.mxu0 %v1467_v8  ;;  %1236 = vmatpush3.msra.mxu1 %v2086_v3 }
  0x35   : > { %115 = vmatpush1.msra.mxu0 %v1462_v7  ;;  %1238 = vmatmul.mubr.f32.vlgmr.msra.gmra.mxu1 %v1737_v51 }
  0x36   : > { %116 = vmatprep.subr.mxu0 %v2081_v5  ;;  %1240 = vmatprep.subr.mxu1 %v2061_v50 }
  0x37   : > { %117 = vmatpush1.msra.mxu0 %v2082_v4  ;;  %1241 = vmatpush3.msra.mxu1 %v1667_v48 }
  0x38   : > { %118 = vmatprep.subr.mxu0 %v2084_v2  ;;  %1242 = vmatprep.subr.mxu1 %v2061_v50 }
  0x39   : > { %119 = vmatpush1.msra.mxu0 %v2085_v1  ;;  %1243 = vmatpush3.msra.mxu1 %v1652_v45 }
  0x3a   : > { %153 = vmatmul.mubr.f32.vlgmr.msra.gmra.mxu0 %v1737_v51  ;;  %326 = vmatprep.subr.mxu0 %v2087_v47 }
  0x3b   : > { %327 = vmatpush1.msra.mxu0 %v1657_v46  ;;  %1244 = vmatprep.subr.mxu1 %v2061_v50 }
  0x3c   : > { %328 = vmatprep.subr.mxu0 %v1647_v44  ;;  %1245 = vmatpush3.msra.mxu1 %v1637_v42 }
  0x3d   : > { %329 = vmatpush1.msra.mxu0 %v1642_v43  ;;  %1246 = vmatprep.subr.mxu1 %v2061_v50 }
  0x3e   : > { %330 = vmatprep.subr.mxu0 %v1632_v41  ;;  %1247 = vmatpush3.msra.mxu1 %v1622_v39 }
  0x3f   : > { %331 = vmatpush1.msra.mxu0 %v1627_v40  ;;  %1248 = vmatprep.subr.mxu1 %v2061_v50 }
  0x40   : > { %332 = vmatprep.subr.mxu0 %v1617_v38  ;;  %1249 = vmatpush3.msra.mxu1 %v1607_v36 }
  0x41   : > { %333 = vmatpush1.msra.mxu0 %v1612_v37  ;;  %1250 = vmatprep.subr.mxu1 %v2061_v50 }
  0x42   : > { %334 = vmatprep.subr.mxu0 %v1602_v35  ;;  %1251 = vmatpush3.msra.mxu1 %v1592_v33 }
  0x43   : > { %335 = vmatpush1.msra.mxu0 %v1597_v34  ;;  %1252 = vmatprep.subr.mxu1 %v2061_v50 }
  0x44   : > { %336 = vmatprep.subr.mxu0 %v1587_v32  ;;  %1253 = vmatpush3.msra.mxu1 %v1577_v30 }
  0x45   : > { %337 = vmatpush1.msra.mxu0 %v1582_v31  ;;  %1254 = vmatprep.subr.mxu1 %v2061_v50 }
  0x46   : > { %338 = vmatprep.subr.mxu0 %v1572_v29  ;;  %1255 = vmatpush3.msra.mxu1 %v1562_v27 }
  0x47   : > { %339 = vmatpush1.msra.mxu0 %v1567_v28  ;;  %1256 = vmatprep.subr.mxu1 %v2061_v50 }
  0x48   : > { %340 = vmatprep.subr.mxu0 %v1557_v26  ;;  %1257 = vmatpush3.msra.mxu1 %v1547_v24 }
  0x49   : > { %341 = vmatpush1.msra.mxu0 %v1552_v25  ;;  %1258 = vmatprep.subr.mxu1 %v2061_v50 }
  0x4a   : > { %342 = vmatprep.subr.mxu0 %v1542_v23  ;;  %1259 = vmatpush3.msra.mxu1 %v1532_v21 }
  0x4b   : > { %343 = vmatpush1.msra.mxu0 %v1537_v22  ;;  %1260 = vmatprep.subr.mxu1 %v2061_v50 }
  0x4c   : > { %344 = vmatprep.subr.mxu0 %v1527_v20  ;;  %1261 = vmatpush3.msra.mxu1 %v1517_v18 }
  0x4d   : > { %345 = vmatpush1.msra.mxu0 %v1522_v19  ;;  %1262 = vmatprep.subr.mxu1 %v2061_v50 }
  0x4e   : > { %346 = vmatprep.subr.mxu0 %v1512_v17  ;;  %1263 = vmatpush3.msra.mxu1 %v1502_v15 }
  0x4f   : > { %347 = vmatpush1.msra.mxu0 %v1507_v16  ;;  %1264 = vmatprep.subr.mxu1 %v2061_v50 }
  0x50   : > { %348 = vmatprep.subr.mxu0 %v1497_v14  ;;  %1265 = vmatpush3.msra.mxu1 %v1487_v12 }
  0x51   : > { %349 = vmatpush1.msra.mxu0 %v1492_v13  ;;  %1266 = vmatprep.subr.mxu1 %v2061_v50 }
  0x52   : > { %350 = vmatprep.subr.mxu0 %v1482_v11  ;;  %1267 = vmatpush3.msra.mxu1 %v1472_v9 }
  0x53   : > { %351 = vmatpush1.msra.mxu0 %v1477_v10  ;;  %1268 = vmatprep.subr.mxu1 %v2061_v50 }
  0x54   : > { %352 = vmatprep.subr.mxu0 %v1467_v8  ;;  %1269 = vmatpush3.msra.mxu1 %v2083_v6 }
  0x55   : > { %353 = vmatpush1.msra.mxu0 %v1462_v7  ;;  %1270 = vmatprep.subr.mxu1 %v2061_v50 }
  0x56   : > { %354 = vmatprep.subr.mxu0 %v2081_v5  ;;  %390 = vmatprep.mubr.f32.mxu0 %v2061_v50 }
  0x57   : > { %355 = vmatpush1.msra.mxu0 %v2082_v4  ;;  %1271 = vmatpush3.msra.mxu1 %v2086_v3  ;;  %v87_v3 = vld [vmem:[%s1823_s4 + $0x10] sm:$0xff] }
  0x58   : > { %356 = vmatprep.subr.mxu0 %v2084_v2  ;;  %1272 = vmatprep.mubr.msk.f32.mxu1 %vm1407_vm0, %v2061_v50 }
  0x59   : > { %357 = vmatpush1.msra.mxu0 %v2085_v1  ;;  %1275 = vmatprep.subr.mxu1 %v2061_v50 }
  0x5a   : > { %564 = vmatprep.subr.mxu0 %v2087_v47 }
  0xf5   : > { %v225_v55 = vpop.f32.mrf.mxu1 }
  0xf6   : > { %v243_v0 = vadd.f32 %v2088_v49, %v225_v55 }
  0xf7   : > { %v1239_v57 = vpop.f32.mrf.mxu1 }
  0xf8   : > { %v256_v57 = vlaneseq }
  0xfa   : > { %v154_v53 = vpop.f32.mrf.mxu0 }
  0xfb   : > { %v229_v54 = vadd.f32 %v154_v53, %v85_v52 }
  0xfc   : > { %v156_v59 = vpop.f32.mrf.mxu0 }
  0xfd   : > { %v1070_v56 = vmul.f32 -1.442695, %v229_v54  ;;  %v236_v60 = vadd.f32 %v156_v59, %v86_v58  ;;  %v1408_v54 = vmov 1966171168   ;;  %v257_v59 = vshrl.u32 %v256_v57, 7 }
  0xff   : > { %1357 = vpow2.f32 %v1070_v56  ;;  %v1071_v61 = vmul.f32 -1.442695, %v236_v60  ;;  %v254_v56 = vunpack.c.l.s4 %v1408_v54 }
 0x101   : > { %1359 = vpow2.f32 %v1071_v61  ;;  %v255_v58 = vunpack.c.0.s8 %v254_v56 }
 0x10c   : > { %v1358_v62 = vpop.eup %1357 }
 0x10d   : > { %v233_v63 = vadd.f32 1.0, %v1358_v62 }
 0x10e   : > { %v1360_v50 = vpop.eup %1359 }
 0x10f   : > { %1361 = vrcp.f32 %v233_v63  ;;  %v240_v53 = vadd.f32 1.0, %v1360_v50  ;;  %v1831_v63 = vsub.s32 %v255_v58, %v257_v59 }
 0x11c   : > { %v1362_v47 = vpop.eup %1361 }
 0x11d   : > { %v244_v52 = vmul.f32 %v1362_v47, %v243_v0  ;;  %v2089_v0 = vmov 0.0  }
 0x11f   : > { %v245_v1 = vadd.f32 %v244_v52, %v87_v3 }
 0x121   : > { %1363 = vtanh.f32 %v245_v1 }
 0x122   : > { %1365 = vrcp.f32 %v240_v53 }
 0x12e   : > { %v1364_v60 = vpop.eup %1363 }
 0x12f   : > { %v247_v61 = vsub.f32 %v1737_v51, %v1364_v60  ;;  %v1366_v62 = vpop.eup %1365 }
 0x131   : > { %v248_v55 = vmul.f32 %v1366_v62, %v247_v61  ;;  %v2090_v61 = vld [vmem:[#allocation3_spill] sm:$0xff]  ;;  %v2091_v62 = vld [vmem:[#allocation5_spill] sm:$0xff] }
 0x133   : > { %v1833_v49 = vadd.f32 %v1364_v60, %v248_v55  ;;  %v2092_v55 = vld [vmem:[#allocation9_spill] sm:$0xff] }
 0x135   : > { %v252_v1 = vcombine.high %v1833_v49, %v1833_v49  ;;  %v259_v3 = vrot.slane %v1833_v49, %v1831_v63  ;;  %391 = vmatmul.mubr.f32.vlgmr.msra.gmra.mxu0 %v1833_v49  ;;  %1273 = vmatmul.mubr.f32.vlgmr.msra.gmra.mxu1 %v1833_v49 }
 0x136   : > { %565 = vmatpush1.msra.mxu0 %v1657_v46  ;;  %1276 = vmatpush3.msra.mxu1 %v1667_v48 }
 0x137   : > { %v266_v47 = vrot.slane %v252_v1, %v1831_v63  ;;  %v267_v50 = vcombine.high %v259_v3, %v259_v3  ;;  %v275_v51 = vrot.slane %v259_v3, %v1831_v63  ;;  %1072 = vst.sshfl [vmem:[%s1838_s8] sm:$0x1 pattern:$0x73625140] %v259_v3  ;;  %566 = vmatprep.subr.mxu0 %v1647_v44  ;;  %v1078_v1 = vld [vmem:[%s1823_s4 + $0x18] sm:$0xff] }
 0x138   : > { %1277 = vmatprep.subr.mxu1 %v2089_v0  ;;  %567 = vmatpush1.msra.mxu0 %v1642_v43 }
 0x139   : > { %1278 = vmatpush3.msra.mxu1 %v1652_v45  ;;  %v268_v52 = vcombine.high %v266_v47, %v266_v47  ;;  %v282_v53 = vrot.slane %v266_v47, %v1831_v63  ;;  %v289_v54 = vrot.slane %v267_v50, %v1831_v63  ;;  %v297_v56 = vcombine.high %v275_v51, %v275_v51 }
 0x13a   : > { %1073 = vst.sshfl [vmem:[%s1838_s8 + $0x8] sm:$0x1 pattern:$0x73625140] %v267_v50  ;;  %568 = vmatprep.subr.mxu0 %v1632_v41  ;;  %1279 = vmatprep.subr.mxu1 %v2089_v0 }
 0x13b   : > { %1074 = vst.sshfl [vmem:[%s1838_s8 + $0x20] sm:$0x1 pattern:$0x73625140] %v266_v47  ;;  %569 = vmatpush1.msra.mxu0 %v1627_v40  ;;  %v296_v57 = vrot.slane %v268_v52, %v1831_v63  ;;  %v298_v58 = vcombine.high %v282_v53, %v282_v53  ;;  %v299_v59 = vcombine.high %v289_v54, %v289_v54  ;;  %312 = vst [vmem:[%s1838_s8 + $0x10] sm:$0x1] %v297_v56 }
 0x13c   : > { %1075 = vst.sshfl [vmem:[%s1838_s8 + $0x28] sm:$0x1 pattern:$0x73625140] %v268_v52  ;;  %1280 = vmatpush3.msra.mxu1 %v1637_v42  ;;  %570 = vmatprep.subr.mxu0 %v1617_v38  ;;  %v1079_v53 = vld [vmem:[%s1823_s4 + $0x20] sm:$0xff] }
 0x13d   : > { %1281 = vmatprep.subr.mxu1 %v2089_v0  ;;  %571 = vmatpush1.msra.mxu0 %v1612_v37  ;;  %v300_v60 = vcombine.high %v296_v57, %v296_v57  ;;  %313 = vst [vmem:[%s1838_s8 + $0x18] sm:$0x1] %v299_v59  ;;  %316 = vst [vmem:[%s1838_s8 + $0x30] sm:$0x1] %v298_v58 }
 0x13e   : > { %1282 = vmatpush3.msra.mxu1 %v1622_v39  ;;  %572 = vmatprep.subr.mxu0 %v1602_v35 }
 0x13f   : > { %1283 = vmatprep.subr.mxu1 %v2089_v0  ;;  %573 = vmatpush1.msra.mxu0 %v1597_v34  ;;  %317 = vst [vmem:[%s1838_s8 + $0x38] sm:$0x1] %v300_v60 }
 0x140   : > { %1284 = vmatpush3.msra.mxu1 %v1607_v36  ;;  %574 = vmatprep.subr.mxu0 %v1587_v32 }
 0x141   : > { %1285 = vmatprep.subr.mxu1 %v2089_v0  ;;  %575 = vmatpush1.msra.mxu0 %v1582_v31 }
 0x142   : > { %1286 = vmatpush3.msra.mxu1 %v1592_v33  ;;  %576 = vmatprep.subr.mxu0 %v1572_v29 }
 0x143   : > { %1287 = vmatprep.subr.mxu1 %v2089_v0  ;;  %577 = vmatpush1.msra.mxu0 %v1567_v28 }
 0x144   : > { %1288 = vmatpush3.msra.mxu1 %v1577_v30  ;;  %578 = vmatprep.subr.mxu0 %v1557_v26 }
 0x145   : > { %1289 = vmatprep.subr.mxu1 %v2089_v0  ;;  %579 = vmatpush1.msra.mxu0 %v1552_v25 }
 0x146   : > { %1290 = vmatpush3.msra.mxu1 %v1562_v27  ;;  %580 = vmatprep.subr.mxu0 %v1542_v23 }
 0x147   : > { %1291 = vmatprep.subr.mxu1 %v2089_v0  ;;  %581 = vmatpush1.msra.mxu0 %v1537_v22 }
 0x148   : > { %1292 = vmatpush3.msra.mxu1 %v1547_v24  ;;  %582 = vmatprep.subr.mxu0 %v1527_v20 }
 0x149   : > { %1293 = vmatprep.subr.mxu1 %v2089_v0  ;;  %583 = vmatpush1.msra.mxu0 %v1522_v19 }
 0x14a   : > { %1294 = vmatpush3.msra.mxu1 %v1532_v21  ;;  %584 = vmatprep.subr.mxu0 %v1512_v17 }
 0x14b   : > { %1295 = vmatprep.subr.mxu1 %v2089_v0  ;;  %585 = vmatpush1.msra.mxu0 %v1507_v16 }
 0x14c   : > { %1296 = vmatpush3.msra.mxu1 %v1517_v18  ;;  %586 = vmatprep.subr.mxu0 %v1497_v14 }
 0x14d   : > { %1297 = vmatprep.subr.mxu1 %v2089_v0  ;;  %587 = vmatpush1.msra.mxu0 %v1492_v13 }
 0x14e   : > { %1298 = vmatpush3.msra.mxu1 %v1502_v15  ;;  %588 = vmatprep.subr.mxu0 %v1482_v11 }
 0x14f   : > { %1299 = vmatprep.subr.mxu1 %v2089_v0  ;;  %589 = vmatpush1.msra.mxu0 %v1477_v10 }
 0x150   : > { %1300 = vmatpush3.msra.mxu1 %v1487_v12  ;;  %590 = vmatprep.subr.mxu0 %v1467_v8 }
 0x151   : > { %1301 = vmatprep.subr.mxu1 %v2089_v0  ;;  %591 = vmatpush1.msra.mxu0 %v1462_v7 }
 0x152   : > { %1302 = vmatpush3.msra.mxu1 %v1472_v9  ;;  %592 = vmatprep.subr.mxu0 %v2081_v5 }
 0x153   : > { %1303 = vmatprep.subr.mxu1 %v2089_v0  ;;  %593 = vmatpush1.msra.mxu0 %v2082_v4 }
 0x154   : > { %1304 = vmatpush3.msra.mxu1 %v2083_v6  ;;  %594 = vmatprep.subr.mxu0 %v2084_v2  ;;  %v1080_v2 = vld [vmem:[%s1823_s4 + $0x28] sm:$0xff] }
 0x155   : > { %1305 = vmatprep.subr.mxu1 %v2089_v0  ;;  %595 = vmatpush1.msra.mxu0 %v2090_v61 }
 0x156   : > { %628 = vmatprep.mubr.f32.mxu0 %v2089_v0  ;;  %1306 = vmatpush3.msra.mxu1 %v2091_v62 }
 0x157   : > { %1307 = vmatprep.mubr.msk.f32.mxu1 %vm1407_vm0, %v2089_v0  ;;  %802 = vmatprep.subr.mxu0 %v2092_v55  ;;  %v2093_v55 = vld [vmem:[#allocation10_spill] sm:$0xff] }
 0x158   : > { %1310 = vmatprep.subr.mxu1 %v2089_v0 }
 0x1f5   : > { %v392_v3 = vpop.f32.mrf.mxu0  ;;  %v463_v47 = vpop.f32.mrf.mxu1 }
 0x1f6   : > { %v467_v50 = vadd.f32 %v1078_v1, %v392_v3  ;;  %v481_v62 = vadd.f32 %v2093_v55, %v463_v47 }
 0x1f7   : > { %v1274_v51 = vpop.f32.mrf.mxu1  ;;  %v394_v54 = vpop.f32.mrf.mxu0 }
 0x1f8   : > { %v1081_v52 = vmul.f32 -1.442695, %v467_v50  ;;  %v474_v56 = vadd.f32 %v1079_v53, %v394_v54 }
 0x1fa   : > { %1367 = vpow2.f32 %v1081_v52  ;;  %v1082_v57 = vmul.f32 -1.442695, %v474_v56 }
 0x1fc   : > { %1369 = vpow2.f32 %v1082_v57 }
 0x207   : > { %v1368_v58 = vpop.eup %1367 }
 0x208   : > { %v471_v59 = vadd.f32 1.0, %v1368_v58 }
 0x209   : > { %v1370_v60 = vpop.eup %1369 }
 0x20a   : > { %1371 = vrcp.f32 %v471_v59  ;;  %v478_v5 = vadd.f32 1.0, %v1370_v60  ;;  %v2094_v59 = vld [vmem:[#allocation7_spill] sm:$0xff]  ;;  %v2095_v60 = vld [vmem:[#allocation6_spill] sm:$0xff] }
 0x217   : > { %v1372_v61 = vpop.eup %1371 }
 0x218   : > { %v482_v6 = vmul.f32 %v1372_v61, %v481_v62 }
 0x21a   : > { %v483_v4 = vadd.f32 %v1080_v2, %v482_v6 }
 0x21c   : > { %1373 = vtanh.f32 %v483_v4 }
 0x21d   : > { %1375 = vrcp.f32 %v478_v5 }
 0x229   : > { %v1374_v1 = vpop.eup %1373 }
 0x22a   : > { %v485_v3 = vsub.f32 %v1833_v49, %v1374_v1  ;;  %v1376_v50 = vpop.eup %1375 }
 0x22c   : > { %v486_v51 = vmul.f32 %v1376_v50, %v485_v3  ;;  %v2097_v3 = vld [vmem:[#allocation4_spill] sm:$0xff]  ;;  %v2098_v50 = vld [vmem:[#allocation3_spill] sm:$0xff] }
 0x22e   : > { %v1931_v52 = vadd.f32 %v1374_v1, %v486_v51  ;;  %v2096_v1 = vld [vmem:[#allocation8_spill] sm:$0xff]  ;;  %v2099_v51 = vld [vmem:[#allocation5_spill] sm:$0xff] }
 0x230   : > { %v490_v53 = vcombine.high %v1931_v52, %v1931_v52  ;;  %v497_v47 = vrot.slane %v1931_v52, %v1831_v63  ;;  %629 = vmatmul.mubr.f32.vlgmr.msra.gmra.mxu0 %v1931_v52  ;;  %1308 = vmatmul.mubr.f32.vlgmr.msra.gmra.mxu1 %v1931_v52 }
 0x231   : > { %803 = vmatpush1.msra.mxu0 %v1657_v46  ;;  %1311 = vmatpush3.msra.mxu1 %v1667_v48 }
 0x232   : > { %v504_v2 = vrot.slane %v490_v53, %v1831_v63  ;;  %v505_v4 = vcombine.high %v497_v47, %v497_v47  ;;  %v513_v5 = vrot.slane %v497_v47, %v1831_v63  ;;  %1125 = vst.sshfl [vmem:[%s1838_s8 + $0x1] sm:$0x1 pattern:$0x73625140] %v497_v47  ;;  %804 = vmatprep.subr.mxu0 %v1647_v44  ;;  %v1094_v53 = vld [vmem:[%s1823_s4 + $0x30] sm:$0xff] }
 0x233   : > { %1312 = vmatprep.subr.mxu1 %v2089_v0  ;;  %805 = vmatpush1.msra.mxu0 %v1642_v43 }
 0x234   : > { %1313 = vmatpush3.msra.mxu1 %v1652_v45  ;;  %v506_v6 = vcombine.high %v504_v2, %v504_v2  ;;  %v520_v49 = vrot.slane %v504_v2, %v1831_v63  ;;  %v527_v61 = vrot.slane %v505_v4, %v1831_v63  ;;  %v535_v62 = vcombine.high %v513_v5, %v513_v5 }
 0x235   : > { %1126 = vst.sshfl [vmem:[%s1838_s8 + $0x9] sm:$0x1 pattern:$0x73625140] %v505_v4  ;;  %806 = vmatprep.subr.mxu0 %v1632_v41  ;;  %1314 = vmatprep.subr.mxu1 %v2089_v0 }
 0x236   : > { %1127 = vst.sshfl [vmem:[%s1838_s8 + $0x21] sm:$0x1 pattern:$0x73625140] %v504_v2  ;;  %807 = vmatpush1.msra.mxu0 %v1627_v40  ;;  %v534_v54 = vrot.slane %v506_v6, %v1831_v63  ;;  %v536_v56 = vcombine.high %v520_v49, %v520_v49  ;;  %v537_v57 = vcombine.high %v527_v61, %v527_v61  ;;  %1086 = vst [vmem:[%s1838_s8 + $0x11] sm:$0x1] %v535_v62 }
 0x237   : > { %1128 = vst.sshfl [vmem:[%s1838_s8 + $0x29] sm:$0x1 pattern:$0x73625140] %v506_v6  ;;  %1315 = vmatpush3.msra.mxu1 %v1637_v42  ;;  %808 = vmatprep.subr.mxu0 %v1617_v38  ;;  %v1095_v49 = vld [vmem:[%s1823_s4 + $0x38] sm:$0xff] }
 0x238   : > { %1316 = vmatprep.subr.mxu1 %v2089_v0  ;;  %809 = vmatpush1.msra.mxu0 %v1612_v37  ;;  %v538_v58 = vcombine.high %v534_v54, %v534_v54  ;;  %1087 = vst [vmem:[%s1838_s8 + $0x19] sm:$0x1] %v537_v57  ;;  %1090 = vst [vmem:[%s1838_s8 + $0x31] sm:$0x1] %v536_v56 }
 0x239   : > { %1317 = vmatpush3.msra.mxu1 %v1622_v39  ;;  %810 = vmatprep.subr.mxu0 %v1602_v35 }
 0x23a   : > { %1318 = vmatprep.subr.mxu1 %v2089_v0  ;;  %811 = vmatpush1.msra.mxu0 %v1597_v34  ;;  %1091 = vst [vmem:[%s1838_s8 + $0x39] sm:$0x1] %v538_v58 }
 0x23b   : > { %1319 = vmatpush3.msra.mxu1 %v1607_v36  ;;  %812 = vmatprep.subr.mxu0 %v1587_v32 }
 0x23c   : > { %1320 = vmatprep.subr.mxu1 %v2089_v0  ;;  %813 = vmatpush1.msra.mxu0 %v1582_v31 }
 0x23d   : > { %1321 = vmatpush3.msra.mxu1 %v1592_v33  ;;  %814 = vmatprep.subr.mxu0 %v1572_v29 }
 0x23e   : > { %1322 = vmatprep.subr.mxu1 %v2089_v0  ;;  %815 = vmatpush1.msra.mxu0 %v1567_v28 }
 0x23f   : > { %1323 = vmatpush3.msra.mxu1 %v1577_v30  ;;  %816 = vmatprep.subr.mxu0 %v1557_v26 }
 0x240   : > { %1324 = vmatprep.subr.mxu1 %v2089_v0  ;;  %817 = vmatpush1.msra.mxu0 %v1552_v25 }
 0x241   : > { %1325 = vmatpush3.msra.mxu1 %v1562_v27  ;;  %818 = vmatprep.subr.mxu0 %v1542_v23 }
 0x242   : > { %1326 = vmatprep.subr.mxu1 %v2089_v0  ;;  %819 = vmatpush1.msra.mxu0 %v1537_v22 }
 0x243   : > { %1327 = vmatpush3.msra.mxu1 %v1547_v24  ;;  %820 = vmatprep.subr.mxu0 %v1527_v20 }
 0x244   : > { %1328 = vmatprep.subr.mxu1 %v2089_v0  ;;  %821 = vmatpush1.msra.mxu0 %v1522_v19 }
 0x245   : > { %1329 = vmatpush3.msra.mxu1 %v1532_v21  ;;  %822 = vmatprep.subr.mxu0 %v1512_v17 }
 0x246   : > { %1330 = vmatprep.subr.mxu1 %v2089_v0  ;;  %823 = vmatpush1.msra.mxu0 %v1507_v16 }
 0x247   : > { %1331 = vmatpush3.msra.mxu1 %v1517_v18  ;;  %824 = vmatprep.subr.mxu0 %v1497_v14 }
 0x248   : > { %1332 = vmatprep.subr.mxu1 %v2089_v0  ;;  %825 = vmatpush1.msra.mxu0 %v1492_v13 }
 0x249   : > { %1333 = vmatpush3.msra.mxu1 %v1502_v15  ;;  %826 = vmatprep.subr.mxu0 %v1482_v11 }
 0x24a   : > { %1334 = vmatprep.subr.mxu1 %v2089_v0  ;;  %827 = vmatpush1.msra.mxu0 %v1477_v10 }
 0x24b   : > { %1335 = vmatpush3.msra.mxu1 %v1487_v12  ;;  %828 = vmatprep.subr.mxu0 %v1467_v8 }
 0x24c   : > { %1336 = vmatprep.subr.mxu1 %v2089_v0  ;;  %829 = vmatpush1.msra.mxu0 %v1462_v7 }
 0x24d   : > { %1337 = vmatpush3.msra.mxu1 %v1472_v9  ;;  %830 = vmatprep.subr.mxu0 %v2094_v59 }
 0x24e   : > { %1338 = vmatprep.subr.mxu1 %v2089_v0  ;;  %831 = vmatpush1.msra.mxu0 %v2095_v60  ;;  %v1096_v60 = vld [vmem:[%s1823_s4 + $0x40] sm:$0xff] }
 0x24f   : > { %1339 = vmatpush3.msra.mxu1 %v2096_v1  ;;  %832 = vmatprep.subr.mxu0 %v2097_v3 }
 0x250   : > { %1340 = vmatprep.subr.mxu1 %v2089_v0  ;;  %833 = vmatpush1.msra.mxu0 %v2098_v50 }
 0x251   : > { %866 = vmatprep.mubr.f32.mxu0 %v2089_v0  ;;  %1341 = vmatpush3.msra.mxu1 %v2099_v51 }
 0x252   : > { %1342 = vmatprep.mubr.msk.f32.mxu1 %vm1407_vm0, %v2089_v0 }
 0x2f0   : > { %v630_v47 = vpop.f32.mrf.mxu0  ;;  %v701_v2 = vpop.f32.mrf.mxu1 }
 0x2f1   : > { %v705_v4 = vadd.f32 %v1094_v53, %v630_v47  ;;  %v719_v59 = vadd.f32 %v2093_v55, %v701_v2 }
 0x2f2   : > { %v1309_v5 = vpop.f32.mrf.mxu1  ;;  %v632_v61 = vpop.f32.mrf.mxu0 }
 0x2f3   : > { %v1097_v6 = vmul.f32 -1.442695, %v705_v4  ;;  %v712_v62 = vadd.f32 %v1095_v49, %v632_v61 }
 0x2f5   : > { %1377 = vpow2.f32 %v1097_v6  ;;  %v1098_v54 = vmul.f32 -1.442695, %v712_v62 }
 0x2f7   : > { %1379 = vpow2.f32 %v1098_v54 }
 0x302   : > { %v1378_v56 = vpop.eup %1377 }
 0x303   : > { %v709_v57 = vadd.f32 1.0, %v1378_v56 }
 0x304   : > { %v1380_v58 = vpop.eup %1379 }
 0x305   : > { %1381 = vrcp.f32 %v709_v57  ;;  %v716_v50 = vadd.f32 1.0, %v1380_v58 }
 0x312   : > { %v1382_v0 = vpop.eup %1381 }
 0x313   : > { %v720_v1 = vmul.f32 %v1382_v0, %v719_v59 }
 0x315   : > { %v721_v3 = vadd.f32 %v1096_v60, %v720_v1  ;;  %v1110_v1 = vld [vmem:[%s1823_s4 + $0x48] sm:$0xff] }
 0x317   : > { %1383 = vtanh.f32 %v721_v3 }
 0x318   : > { %1385 = vrcp.f32 %v716_v50 }
 0x324   : > { %v1384_v51 = vpop.eup %1383 }
 0x325   : > { %v723_v53 = vsub.f32 %v1931_v52, %v1384_v51  ;;  %v1386_v47 = vpop.eup %1385 }
 0x327   : > { %v724_v4 = vmul.f32 %v1386_v47, %v723_v53 }
 0x329   : > { %v725_v5 = vadd.f32 %v1384_v51, %v724_v4  ;;  %v1111_v4 = vld [vmem:[%s1823_s4 + $0x50] sm:$0xff] }
 0x32b   : > { %v728_v6 = vcombine.high %v725_v5, %v725_v5  ;;  %v735_v49 = vrot.slane %v725_v5, %v1831_v63  ;;  %867 = vmatmul.mubr.f32.vlgmr.msra.gmra.mxu0 %v725_v5  ;;  %1343 = vmatmul.mubr.f32.vlgmr.msra.gmra.mxu1 %v725_v5 }
 0x32d   : > { %v742_v2 = vrot.slane %v728_v6, %v1831_v63  ;;  %v743_v61 = vcombine.high %v735_v49, %v735_v49  ;;  %v751_v62 = vrot.slane %v735_v49, %v1831_v63  ;;  %1129 = vst.sshfl [vmem:[%s1838_s8 + $0x2] sm:$0x1 pattern:$0x73625140] %v735_v49 }
 0x32f   : > { %v744_v52 = vcombine.high %v742_v2, %v742_v2  ;;  %v758_v54 = vrot.slane %v742_v2, %v1831_v63  ;;  %v765_v56 = vrot.slane %v743_v61, %v1831_v63  ;;  %v773_v57 = vcombine.high %v751_v62, %v751_v62  ;;  %1130 = vst.sshfl [vmem:[%s1838_s8 + $0xa] sm:$0x1 pattern:$0x73625140] %v743_v61 }
 0x330   : > { %1131 = vst.sshfl [vmem:[%s1838_s8 + $0x22] sm:$0x1 pattern:$0x73625140] %v742_v2 }
 0x331   : > { %v772_v58 = vrot.slane %v744_v52, %v1831_v63  ;;  %v774_v59 = vcombine.high %v758_v54, %v758_v54  ;;  %v775_v0 = vcombine.high %v765_v56, %v765_v56  ;;  %1102 = vst [vmem:[%s1838_s8 + $0x12] sm:$0x1] %v773_v57  ;;  %1132 = vst.sshfl [vmem:[%s1838_s8 + $0x2a] sm:$0x1 pattern:$0x73625140] %v744_v52 }
 0x332   : > { %v1112_v57 = vld [vmem:[%s1823_s4 + $0x58] sm:$0xff] }
 0x333   : > { %v776_v60 = vcombine.high %v772_v58, %v772_v58  ;;  %1103 = vst [vmem:[%s1838_s8 + $0x1a] sm:$0x1] %v775_v0  ;;  %1106 = vst [vmem:[%s1838_s8 + $0x32] sm:$0x1] %v774_v59 }
 0x335   : > { %1107 = vst [vmem:[%s1838_s8 + $0x3a] sm:$0x1] %v776_v60 }
 0x3eb   : > { %v868_v3 = vpop.f32.mrf.mxu0  ;;  %v939_v50 = vpop.f32.mrf.mxu1 }
 0x3ec   : > { %v943_v51 = vadd.f32 %v1110_v1, %v868_v3  ;;  %v957_v54 = vadd.f32 %v2093_v55, %v939_v50 }
 0x3ed   : > { %v1344_v53 = vpop.f32.mrf.mxu1  ;;  %v870_v6 = vpop.f32.mrf.mxu0 }
 0x3ee   : > { %v1113_v47 = vmul.f32 -1.442695, %v943_v51  ;;  %v950_v49 = vadd.f32 %v1111_v4, %v870_v6 }
 0x3f0   : > { %1387 = vpow2.f32 %v1113_v47  ;;  %v1114_v2 = vmul.f32 -1.442695, %v950_v49 }
 0x3f2   : > { %1389 = vpow2.f32 %v1114_v2 }
 0x3fd   : > { %v1388_v61 = vpop.eup %1387 }
 0x3fe   : > { %v947_v62 = vadd.f32 1.0, %v1388_v61 }
 0x3ff   : > { %v1390_v52 = vpop.eup %1389 }
 0x400   : > { %1391 = vrcp.f32 %v947_v62  ;;  %v954_v0 = vadd.f32 1.0, %v1390_v52 }
 0x40d   : > { %v1392_v56 = vpop.eup %1391 }
 0x40e   : > { %v958_v58 = vmul.f32 %v1392_v56, %v957_v54 }
 0x410   : > { %v959_v59 = vadd.f32 %v1112_v57, %v958_v58 }
 0x412   : > { %1393 = vtanh.f32 %v959_v59 }
 0x413   : > { %1395 = vrcp.f32 %v954_v0 }
 0x41f   : > { %v1394_v60 = vpop.eup %1393 }
 0x420   : > { %v961_v1 = vsub.f32 %v725_v5, %v1394_v60  ;;  %v1396_v3 = vpop.eup %1395 }
 0x422   : > { %v962_v51 = vmul.f32 %v1396_v3, %v961_v1 }
 0x424   : > { %v963_v53 = vadd.f32 %v1394_v60, %v962_v51 }
 0x426   : > { %964 = vst [vmem:[#allocation2] sm:$0xff] %v963_v53  ;;  %v966_v47 = vcombine.high %v963_v53, %v963_v53  ;;  %v973_v55 = vrot.slane %v963_v53, %v1831_v63 }
 0x428   : > { %v980_v50 = vrot.slane %v966_v47, %v1831_v63  ;;  %v981_v4 = vcombine.high %v973_v55, %v973_v55  ;;  %v989_v6 = vrot.slane %v973_v55, %v1831_v63  ;;  %1133 = vst.sshfl [vmem:[%s1838_s8 + $0x3] sm:$0x1 pattern:$0x73625140] %v973_v55 }
 0x42a   : > { %v982_v5 = vcombine.high %v980_v50, %v980_v50  ;;  %v996_v49 = vrot.slane %v980_v50, %v1831_v63  ;;  %v1003_v2 = vrot.slane %v981_v4, %v1831_v63  ;;  %v1011_v61 = vcombine.high %v989_v6, %v989_v6  ;;  %1134 = vst.sshfl [vmem:[%s1838_s8 + $0xb] sm:$0x1 pattern:$0x73625140] %v981_v4 }
 0x42b   : > { %1135 = vst.sshfl [vmem:[%s1838_s8 + $0x23] sm:$0x1 pattern:$0x73625140] %v980_v50 }
 0x42c   : > { %v1010_v62 = vrot.slane %v982_v5, %v1831_v63  ;;  %v1012_v52 = vcombine.high %v996_v49, %v996_v49  ;;  %v1013_v54 = vcombine.high %v1003_v2, %v1003_v2  ;;  %1118 = vst [vmem:[%s1838_s8 + $0x13] sm:$0x1] %v1011_v61  ;;  %1136 = vst.sshfl [vmem:[%s1838_s8 + $0x2b] sm:$0x1 pattern:$0x73625140] %v982_v5 }
 0x42d   :  { %78 = sbr.rel (!%p76_p0) target bundleno = 20 (0x14), region = 51 }
 0x42e   : > { %v1014_v56 = vcombine.high %v1010_v62, %v1010_v62  ;;  %1119 = vst [vmem:[%s1838_s8 + $0x1b] sm:$0x1] %v1013_v54  ;;  %1122 = vst [vmem:[%s1838_s8 + $0x33] sm:$0x1] %v1012_v52 }
 0x430   : > { %1123 = vst [vmem:[%s1838_s8 + $0x3b] sm:$0x1] %v1014_v56 }

// kernel: recovery_forward.2
= control target key start
LH: loop header
LB: loop body
LE: loop exit
PB: predicated region body
PF: predicated region fallthrough
CT: control target
= control target key end

     0   :  { %vm37_vm0 = vcmask 130048   ;;  %v582_v58 = vmov 0.0   ;;  %s893_s1 = inlined_call_operand.vmem [shape: f32[16,128], index: 1, kind: input, shape index: {}]   ;;  %s894_s0 = inlined_call_operand.vmem [shape: f32[64,16], index: 0, kind: input, shape index: {}]   ;;  %s895_s3 = inlined_call_operand.vmem [shape: f32[128,384], index: 3, kind: input, shape index: {}]   ;;  %s896_s2 = inlined_call_operand.vmem [shape: f32[1,128], index: 2, kind: input, shape index: {}]   ;;  %s897_s4 = inlined_call_operand.vmem [shape: f32[1,384], index: 4, kind: input, shape index: {}]   ;;  %s898_s5 = inlined_call_operand.vmem [shape: f32[64,384], index: 5, kind: output, shape index: {}]  }
   0x1   :  { %v29_v0 = vld [vmem:[%s893_s1 + $0x8] sm:$0xff]  ;;  %v28_v1 = vld [vmem:[%s893_s1] sm:$0xff]  ;;  %v22_v4 = vld [vmem:[%s894_s0 + $0x10] sm:$0xff]  ;;  %296 = vmatprep.mubr.f32.mxu1 %v582_v58 }
   0x2   :  { %v20_v2 = vld [vmem:[%s894_s0] sm:$0xff]  ;;  %521 = vmatprep.subr.mxu0 %v29_v0  ;;  %v21_v3 = vld [vmem:[%s894_s0 + $0x8] sm:$0xff]  ;;  %v213_v5 = vld [vmem:[%s895_s3 + $0x170] sm:$0xff] }
   0x3   :  { %525 = vmatprep.mubr.msk.f32.mxu0 %vm37_vm0, %v20_v2  ;;  %522 = vmatpush3.msra.mxu0 %v29_v0  ;;  %v212_v6 = vld [vmem:[%s895_s3 + $0x168] sm:$0xff]  ;;  %v214_v7 = vld [vmem:[%s895_s3 + $0x178] sm:$0xff]  ;;  %v209_v9 = vld [vmem:[%s895_s3 + $0x150] sm:$0xff] }
   0x4   :  { %523 = vmatprep.subr.mxu0 %v28_v1  ;;  %232 = vmatprep.subr.mxu1 %v213_v5  ;;  %v210_v8 = vld [vmem:[%s895_s3 + $0x158] sm:$0xff]  ;;  %v211_v10 = vld [vmem:[%s895_s3 + $0x160] sm:$0xff]  ;;  %v208_v15 = vld [vmem:[%s895_s3 + $0x148] sm:$0xff] }
   0x5   :  { %524 = vmatpush3.msra.mxu0 %v28_v1  ;;  %233 = vmatpush1.msra.mxu1 %v212_v6  ;;  %v23_v11 = vld [vmem:[%s894_s0 + $0x18] sm:$0xff]  ;;  %v207_v12 = vld [vmem:[%s895_s3 + $0x140] sm:$0xff]  ;;  %v204_v16 = vld [vmem:[%s895_s3 + $0x128] sm:$0xff] }
   0x6   :  { %526 = vmatmul.mubr.msk.f32.vlgmr.msra.gmra.mxu0 %vm37_vm0, %v21_v3  ;;  %537 = vmatprep.subr.mxu0 %v214_v7  ;;  %v24_v13 = vld [vmem:[%s894_s0 + $0x20] sm:$0xff]  ;;  %v206_v14 = vld [vmem:[%s895_s3 + $0x138] sm:$0xff]  ;;  %v25_v17 = vld [vmem:[%s894_s0 + $0x28] sm:$0xff] }
   0x7   :  { %528 = vmatprep.mubr.msk.f32.mxu0 %vm37_vm0, %v22_v4  ;;  %234 = vmatprep.subr.mxu1 %v210_v8  ;;  %v203_v18 = vld [vmem:[%s895_s3 + $0x120] sm:$0xff]  ;;  %v26_v19 = vld [vmem:[%s894_s0 + $0x30] sm:$0xff]  ;;  %v200_v22 = vld [vmem:[%s895_s3 + $0x108] sm:$0xff] }
   0x8   :  { %538 = vmatpush3.msra.mxu0 %v214_v7  ;;  %235 = vmatpush1.msra.mxu1 %v209_v9  ;;  %v205_v20 = vld [vmem:[%s895_s3 + $0x130] sm:$0xff]  ;;  %v202_v23 = vld [vmem:[%s895_s3 + $0x118] sm:$0xff]  ;;  %v199_v27 = vld [vmem:[%s895_s3 + $0x100] sm:$0xff] }
   0x9   :  { %539 = vmatprep.subr.mxu0 %v211_v10  ;;  %236 = vmatprep.subr.mxu1 %v207_v12  ;;  %v201_v21 = vld [vmem:[%s895_s3 + $0x110] sm:$0xff]  ;;  %v27_v24 = vld [vmem:[%s894_s0 + $0x38] sm:$0xff]  ;;  %v195_v28 = vld [vmem:[%s895_s3 + $0xe0] sm:$0xff]  ;;  %v217_v12 = vlaneseq }
   0xa   :  { %529 = vmatmul.mubr.msk.f32.gmra.mxu0 %vm37_vm0, %v23_v11  ;;  %237 = vmatpush1.msra.mxu1 %v206_v14  ;;  %v198_v25 = vld [vmem:[%s895_s3 + $0xf8] sm:$0xff]  ;;  %v197_v26 = vld [vmem:[%s895_s3 + $0xf0] sm:$0xff]  ;;  %v196_v30 = vld [vmem:[%s895_s3 + $0xe8] sm:$0xff] }
   0xb   :  { %531 = vmatprep.mubr.msk.f32.mxu0 %vm37_vm0, %v24_v13  ;;  %540 = vmatpush3.msra.mxu0 %v211_v10  ;;  %v194_v29 = vld [vmem:[%s895_s3 + $0xd8] sm:$0xff]  ;;  %v192_v31 = vld [vmem:[%s895_s3 + $0xc8] sm:$0xff]  ;;  %v191_v32 = vld [vmem:[%s895_s3 + $0xc0] sm:$0xff]  ;;  %v218_v13 = vshrl.u32 %v217_v12, 7 }
   0xc   :  { %541 = vmatprep.subr.mxu0 %v208_v15  ;;  %238 = vmatprep.subr.mxu1 %v204_v16  ;;  %v193_v33 = vld [vmem:[%s895_s3 + $0xd0] sm:$0xff]  ;;  %v188_v35 = vld [vmem:[%s895_s3 + $0xa8] sm:$0xff]  ;;  %v190_v36 = vld [vmem:[%s895_s3 + $0xb8] sm:$0xff] }
   0xd   :  { %542 = vmatpush3.msra.mxu0 %v208_v15  ;;  %239 = vmatpush1.msra.mxu1 %v203_v18  ;;  %v189_v34 = vld [vmem:[%s895_s3 + $0xb0] sm:$0xff]  ;;  %v186_v37 = vld [vmem:[%s895_s3 + $0x98] sm:$0xff]  ;;  %v187_v39 = vld [vmem:[%s895_s3 + $0xa0] sm:$0xff]  ;;  %v219_v14 = vsub.s32 0, %v218_v13  ;;  %v227_v16 = vsub.s32 2, %v218_v13 }
   0xe   :  { %532 = vmatmul.mubr.msk.f32.gmra.mxu0 %vm37_vm0, %v25_v17  ;;  %543 = vmatprep.subr.mxu0 %v205_v20  ;;  %v185_v38 = vld [vmem:[%s895_s3 + $0x90] sm:$0xff]  ;;  %v183_v40 = vld [vmem:[%s895_s3 + $0x80] sm:$0xff]  ;;  %v182_v41 = vld [vmem:[%s895_s3 + $0x78] sm:$0xff]  ;;  %v223_v17 = vsub.s32 1, %v218_v13 }
   0xf   :  { %534 = vmatprep.mubr.msk.f32.mxu0 %vm37_vm0, %v26_v19  ;;  %240 = vmatprep.subr.mxu1 %v201_v21  ;;  %v184_v42 = vld [vmem:[%s895_s3 + $0x88] sm:$0xff]  ;;  %v179_v44 = vld [vmem:[%s895_s3 + $0x60] sm:$0xff]  ;;  %v181_v45 = vld [vmem:[%s895_s3 + $0x70] sm:$0xff] }
  0x10   :  { %544 = vmatpush3.msra.mxu0 %v205_v20  ;;  %241 = vmatpush1.msra.mxu1 %v200_v22  ;;  %v180_v43 = vld [vmem:[%s895_s3 + $0x68] sm:$0xff]  ;;  %v177_v46 = vld [vmem:[%s895_s3 + $0x50] sm:$0xff]  ;;  %v178_v48 = vld [vmem:[%s895_s3 + $0x58] sm:$0xff] }
  0x11   :  { %545 = vmatprep.subr.mxu0 %v202_v23  ;;  %242 = vmatprep.subr.mxu1 %v198_v25  ;;  %v176_v47 = vld [vmem:[%s895_s3 + $0x48] sm:$0xff]  ;;  %v174_v49 = vld [vmem:[%s895_s3 + $0x38] sm:$0xff]  ;;  %v173_v50 = vld [vmem:[%s895_s3 + $0x30] sm:$0xff] }
  0x12   :  { %535 = vmatmul.mubr.msk.f32.gmra.mxu0 %vm37_vm0, %v27_v24  ;;  %243 = vmatpush1.msra.mxu1 %v197_v26  ;;  %v175_v51 = vld [vmem:[%s895_s3 + $0x40] sm:$0xff]  ;;  %v170_v53 = vld [vmem:[%s895_s3 + $0x18] sm:$0xff]  ;;  %v172_v54 = vld [vmem:[%s895_s3 + $0x28] sm:$0xff] }
  0x13   :  { %546 = vmatpush3.msra.mxu0 %v202_v23  ;;  %244 = vmatprep.subr.mxu1 %v195_v28  ;;  %v171_v52 = vld [vmem:[%s895_s3 + $0x20] sm:$0xff]  ;;  %v168_v55 = vld [vmem:[%s895_s3 + $0x8] sm:$0xff]  ;;  %v169_v57 = vld [vmem:[%s895_s3 + $0x10] sm:$0xff] }
  0x14   :  { %547 = vmatprep.subr.mxu0 %v199_v27  ;;  %245 = vmatpush1.msra.mxu1 %v194_v29  ;;  %v167_v56 = vld [vmem:[%s895_s3] sm:$0xff] }
  0x15   :  { %548 = vmatpush3.msra.mxu0 %v199_v27  ;;  %246 = vmatprep.subr.mxu1 %v192_v31  ;;  %v478_v60 = vld [vmem:[%s896_s2] ss:$0 sm:$0xff] }
  0x16   :  { %549 = vmatprep.subr.mxu0 %v196_v30  ;;  %247 = vmatpush1.msra.mxu1 %v191_v32  ;;  %v215_v15 = vld [vmem:[%s897_s4] sm:$0x7] }
  0x17   :  { %550 = vmatpush3.msra.mxu0 %v196_v30  ;;  %248 = vmatprep.subr.mxu1 %v189_v34  ;;  %v801_v18 = vrot.slane %v215_v15, %v219_v14  ;;  %v228_v19 = vrot.slane %v215_v15, %v227_v16  ;;  %v803_v20 = vrot.slane %v215_v15, %v223_v17 }
  0x18   :  { %551 = vmatprep.subr.mxu0 %v193_v33  ;;  %249 = vmatpush1.msra.mxu1 %v188_v35 }
  0x19   :  { %552 = vmatpush3.msra.mxu0 %v193_v33  ;;  %250 = vmatprep.subr.mxu1 %v186_v37 }
  0x1a   :  { %553 = vmatprep.subr.mxu0 %v190_v36  ;;  %251 = vmatpush1.msra.mxu1 %v185_v38 }
  0x1b   :  { %554 = vmatpush3.msra.mxu0 %v190_v36  ;;  %252 = vmatprep.subr.mxu1 %v183_v40 }
  0x1c   :  { %555 = vmatprep.subr.mxu0 %v187_v39  ;;  %253 = vmatpush1.msra.mxu1 %v182_v41 }
  0x1d   :  { %556 = vmatpush3.msra.mxu0 %v187_v39  ;;  %254 = vmatprep.subr.mxu1 %v180_v43 }
  0x1e   :  { %557 = vmatprep.subr.mxu0 %v184_v42  ;;  %255 = vmatpush1.msra.mxu1 %v179_v44 }
  0x1f   :  { %558 = vmatpush3.msra.mxu0 %v184_v42  ;;  %256 = vmatprep.subr.mxu1 %v177_v46 }
  0x20   :  { %559 = vmatprep.subr.mxu0 %v181_v45  ;;  %257 = vmatpush1.msra.mxu1 %v176_v47 }
  0x21   :  { %560 = vmatpush3.msra.mxu0 %v181_v45  ;;  %258 = vmatprep.subr.mxu1 %v174_v49 }
  0x22   :  { %561 = vmatprep.subr.mxu0 %v178_v48  ;;  %259 = vmatpush1.msra.mxu1 %v173_v50 }
  0x23   :  { %562 = vmatpush3.msra.mxu0 %v178_v48  ;;  %260 = vmatprep.subr.mxu1 %v171_v52 }
  0x24   :  { %563 = vmatprep.subr.mxu0 %v175_v51  ;;  %261 = vmatpush1.msra.mxu1 %v170_v53 }
  0x25   :  { %564 = vmatpush3.msra.mxu0 %v175_v51  ;;  %262 = vmatprep.subr.mxu1 %v168_v55 }
  0x26   :  { %565 = vmatprep.subr.mxu0 %v172_v54  ;;  %263 = vmatpush1.msra.mxu1 %v167_v56 }
  0x27   :  { %566 = vmatpush3.msra.mxu0 %v172_v54 }
  0x28   :  { %567 = vmatprep.subr.mxu0 %v169_v57 }
  0x29   :  { %568 = vmatpush3.msra.mxu0 %v169_v57 }
  0xc6   :  { %v527_v59 = vpop.f32.mrf.mxu0 }
  0xc7   :  { %v134_v63 = vadd.f32 %v527_v59, %v478_v60 }
  0xc8   :  { %v128_v61 = vpop.f32.mrf.mxu0 }
  0xc9   :  { %v129_v62 = vadd.f32 %v478_v60, %v128_v61 }
  0xca   :  { %v530_v0 = vpop.f32.mrf.mxu0 }
  0xcb   :  { %297 = vmatmul.mubr.f32.vlgmr.msra.gmra.mxu1 %v129_v62  ;;  %569 = vmatprep.mubr.f32.mxu0 %v129_v62  ;;  %v144_v1 = vadd.f32 %v530_v0, %v478_v60 }
  0xcc   :  { %v138_v2 = vpop.f32.mrf.mxu0  ;;  %570 = vmatmul.mubr.f32.vlgmr.msra.gmra.mxu0 %v134_v63  ;;  %302 = vmatprep.mubr.f32.mxu1 %v582_v58 }
  0xcd   :  { %v139_v3 = vadd.f32 %v478_v60, %v138_v2 }
  0xce   :  { %v533_v4 = vpop.f32.mrf.mxu0 }
  0xcf   :  { %303 = vmatmul.mubr.f32.gmra.mxu1 %v134_v63  ;;  %572 = vmatprep.mubr.f32.mxu0 %v139_v3  ;;  %v154_v5 = vadd.f32 %v533_v4, %v478_v60 }
  0xd0   :  { %573 = vmatmul.mubr.f32.gmra.mxu0 %v144_v1  ;;  %308 = vmatprep.mubr.f32.mxu1 %v582_v58  ;;  %v148_v6 = vpop.f32.mrf.mxu0 }
  0xd1   :  { %v149_v7 = vadd.f32 %v478_v60, %v148_v6 }
  0xd2   :  { %v536_v8 = vpop.f32.mrf.mxu0 }
  0xd3   :  { %309 = vmatmul.mubr.f32.gmra.mxu1 %v139_v3  ;;  %575 = vmatprep.mubr.f32.mxu0 %v149_v7  ;;  %v164_v9 = vadd.f32 %v536_v8, %v478_v60 }
  0xd4   :  { %314 = vmatprep.mubr.f32.mxu1 %v582_v58  ;;  %576 = vmatmul.mubr.f32.gmra.mxu0 %v154_v5  ;;  %v158_v10 = vpop.f32.mrf.mxu0 }
  0xd5   :  { %v159_v11 = vadd.f32 %v478_v60, %v158_v10 }
  0xd7   :  { %315 = vmatmul.mubr.f32.gmra.mxu1 %v144_v1  ;;  %578 = vmatprep.mubr.f32.mxu0 %v159_v11 }
  0xd8   :  { %320 = vmatprep.mubr.f32.mxu1 %v582_v58  ;;  %579 = vmatmul.mubr.f32.gmra.mxu0 %v164_v9 }
  0xdb   :  { %321 = vmatmul.mubr.f32.gmra.mxu1 %v149_v7 }
  0xdc   :  { %326 = vmatprep.mubr.f32.mxu1 %v582_v58 }
  0xdf   :  { %327 = vmatmul.mubr.f32.gmra.mxu1 %v154_v5 }
  0xe0   :  { %332 = vmatprep.mubr.f32.mxu1 %v582_v58 }
  0xe3   :  { %333 = vmatmul.mubr.f32.gmra.mxu1 %v159_v11 }
  0xe4   :  { %338 = vmatprep.mubr.f32.mxu1 %v582_v58 }
  0xe7   :  { %339 = vmatmul.mubr.f32.gmra.mxu1 %v164_v9 }
 0x18b   :  { %v298_v21 = vpop.f32.mrf.mxu1 }
 0x18c   :  { %v299_v22 = vadd.f32 %v298_v21, %v801_v18  ;;  %v571_v23 = vpop.f32.mrf.mxu0 }
 0x18d   :  { %v417_v24 = vadd.f32 %v571_v23, %v228_v19  ;;  %v300_v25 = vpop.f32.mrf.mxu1 }
 0x18e   :  { %450 = vst [vmem:[%s898_s5] sm:$0xff] %v299_v22  ;;  %v301_v26 = vadd.f32 %v300_v25, %v803_v20  ;;  %v411_v27 = vpop.f32.mrf.mxu0 }
 0x18f   :  { %455 = vst [vmem:[%s898_s5 + $0x28] sm:$0xff] %v417_v24  ;;  %v412_v28 = vadd.f32 %v411_v27, %v228_v19  ;;  %v304_v29 = vpop.f32.mrf.mxu1 }
 0x190   :  { %451 = vst [vmem:[%s898_s5 + $0x8] sm:$0xff] %v301_v26  ;;  %v305_v30 = vadd.f32 %v304_v29, %v801_v18  ;;  %v574_v31 = vpop.f32.mrf.mxu0 }
 0x191   :  { %452 = vst [vmem:[%s898_s5 + $0x10] sm:$0xff] %v412_v28  ;;  %v427_v32 = vadd.f32 %v574_v31, %v228_v19  ;;  %v306_v33 = vpop.f32.mrf.mxu1 }
 0x192   :  { %453 = vst [vmem:[%s898_s5 + $0x18] sm:$0xff] %v305_v30  ;;  %v307_v34 = vadd.f32 %v306_v33, %v803_v20  ;;  %v421_v35 = vpop.f32.mrf.mxu0 }
 0x193   :  { %461 = vst [vmem:[%s898_s5 + $0x58] sm:$0xff] %v427_v32  ;;  %v422_v36 = vadd.f32 %v421_v35, %v228_v19  ;;  %v310_v37 = vpop.f32.mrf.mxu1 }
 0x194   :  { %454 = vst [vmem:[%s898_s5 + $0x20] sm:$0xff] %v307_v34  ;;  %v311_v38 = vadd.f32 %v310_v37, %v801_v18  ;;  %v577_v39 = vpop.f32.mrf.mxu0 }
 0x195   :  { %458 = vst [vmem:[%s898_s5 + $0x40] sm:$0xff] %v422_v36  ;;  %v312_v40 = vpop.f32.mrf.mxu1  ;;  %v437_v41 = vadd.f32 %v577_v39, %v228_v19 }
 0x196   :  { %456 = vst [vmem:[%s898_s5 + $0x30] sm:$0xff] %v311_v38  ;;  %v313_v42 = vadd.f32 %v312_v40, %v803_v20  ;;  %v431_v43 = vpop.f32.mrf.mxu0 }
 0x197   :  { %v316_v44 = vpop.f32.mrf.mxu1  ;;  %467 = vst [vmem:[%s898_s5 + $0x88] sm:$0xff] %v437_v41  ;;  %v432_v45 = vadd.f32 %v431_v43, %v228_v19 }
 0x198   :  { %457 = vst [vmem:[%s898_s5 + $0x38] sm:$0xff] %v313_v42  ;;  %v317_v46 = vadd.f32 %v316_v44, %v801_v18  ;;  %v580_v47 = vpop.f32.mrf.mxu0 }
 0x199   :  { %v318_v48 = vpop.f32.mrf.mxu1  ;;  %464 = vst [vmem:[%s898_s5 + $0x70] sm:$0xff] %v432_v45  ;;  %v447_v49 = vadd.f32 %v580_v47, %v228_v19 }
 0x19a   :  { %459 = vst [vmem:[%s898_s5 + $0x48] sm:$0xff] %v317_v46  ;;  %v319_v50 = vadd.f32 %v318_v48, %v803_v20  ;;  %v441_v51 = vpop.f32.mrf.mxu0 }
 0x19b   :  { %v322_v52 = vpop.f32.mrf.mxu1  ;;  %473 = vst [vmem:[%s898_s5 + $0xb8] sm:$0xff] %v447_v49  ;;  %v442_v53 = vadd.f32 %v441_v51, %v228_v19 }
 0x19c   :  { %460 = vst [vmem:[%s898_s5 + $0x50] sm:$0xff] %v319_v50  ;;  %v323_v54 = vadd.f32 %v322_v52, %v801_v18 }
 0x19d   :  { %v324_v55 = vpop.f32.mrf.mxu1  ;;  %470 = vst [vmem:[%s898_s5 + $0xa0] sm:$0xff] %v442_v53 }
 0x19e   :  { %462 = vst [vmem:[%s898_s5 + $0x60] sm:$0xff] %v323_v54  ;;  %v325_v56 = vadd.f32 %v324_v55, %v803_v20 }
 0x19f   :  { %v328_v57 = vpop.f32.mrf.mxu1 }
 0x1a0   :  { %463 = vst [vmem:[%s898_s5 + $0x68] sm:$0xff] %v325_v56  ;;  %v329_v58 = vadd.f32 %v328_v57, %v801_v18 }
 0x1a1   :  { %v330_v59 = vpop.f32.mrf.mxu1 }
 0x1a2   :  { %465 = vst [vmem:[%s898_s5 + $0x78] sm:$0xff] %v329_v58  ;;  %v331_v60 = vadd.f32 %v330_v59, %v803_v20 }
 0x1a3   :  { %v334_v61 = vpop.f32.mrf.mxu1 }
 0x1a4   :  { %466 = vst [vmem:[%s898_s5 + $0x80] sm:$0xff] %v331_v60  ;;  %v335_v62 = vadd.f32 %v334_v61, %v801_v18 }
 0x1a5   :  { %v336_v63 = vpop.f32.mrf.mxu1 }
 0x1a6   :  { %468 = vst [vmem:[%s898_s5 + $0x90] sm:$0xff] %v335_v62  ;;  %v337_v0 = vadd.f32 %v336_v63, %v803_v20 }
 0x1a7   :  { %v340_v1 = vpop.f32.mrf.mxu1 }
 0x1a8   :  { %469 = vst [vmem:[%s898_s5 + $0x98] sm:$0xff] %v337_v0  ;;  %v341_v2 = vadd.f32 %v340_v1, %v801_v18 }
 0x1a9   :  { %v342_v3 = vpop.f32.mrf.mxu1 }
 0x1aa   :  { %471 = vst [vmem:[%s898_s5 + $0xa8] sm:$0xff] %v341_v2  ;;  %v343_v4 = vadd.f32 %v342_v3, %v803_v20 }
 0x1ac   :  { %472 = vst [vmem:[%s898_s5 + $0xb0] sm:$0xff] %v343_v4 }

</bundles_post_ra>
